<compile_context>
chip_gen: v7x
topology: tpu7x:2x2x1
jax: 0.10.0
libtpu: 0.0.40
codegen_flags: <defaults>
</compile_context>

<pallas_src>
import jax
import jax.numpy as jnp
import numpy as np
from jax.experimental import pallas as pl
from jax.experimental.pallas import tpu as pltpu


def gru_encoder_kernel(tok_ref,    # scalar prefetch: (T,) int32 token ids (SMEM)
                       emb_ref,    # (V, E)   embedding table (resident in VMEM)
                       h0_ref,     # (1, H)   initial hidden state
                       wih_ref,    # (3, E, H) input->gate weights, gate order [r,z,n]
                       whh_ref,    # (3, H, H) hidden->gate weights, gate order [r,z,n]
                       b_ref,      # (4, 1, H) biases: [b_r, b_z, b_in, b_hn]
                       out_ref,    # (T, H)   hidden state after every timestep
                       x_scr):     # VMEM scratch: (T, E) gathered embeddings
    T, _H = out_ref.shape

    # 1) Gather all token embeddings into the (T, E) scratch (dynamic sublane
    #    loads from the resident table; static-index stores).
    for t in range(T):
        x_scr[t:t + 1, :] = emb_ref[pl.ds(tok_ref[t], 1), :]
    x_all = x_scr[...]                                            # (T, E)

    # 2) Input-side projections hoisted out of the recurrence: one batched
    #    matmul per gate, biases folded in.
    gi_r = jnp.dot(x_all, wih_ref[0], preferred_element_type=jnp.float32) + b_ref[0]
    gi_z = jnp.dot(x_all, wih_ref[1], preferred_element_type=jnp.float32) + b_ref[1]
    gi_n = jnp.dot(x_all, wih_ref[2], preferred_element_type=jnp.float32) + b_ref[2]

    w_r = whh_ref[0]                                              # (H, H)
    w_z = whh_ref[1]
    w_n = whh_ref[2]
    b_hn = b_ref[3]                                               # (1, H)

    # 3) Sequential GRU recurrence, fully unrolled (T is small & static).
    h = h0_ref[...]                                               # (1, H)
    for t in range(T):
        gh_r = jnp.dot(h, w_r, preferred_element_type=jnp.float32)
        gh_z = jnp.dot(h, w_z, preferred_element_type=jnp.float32)
        gh_n = jnp.dot(h, w_n, preferred_element_type=jnp.float32)
        # PyTorch GRU gate math (gate order r, z, n).
        r = jax.nn.sigmoid(gi_r[t:t + 1, :] + gh_r)
        z = jax.nn.sigmoid(gi_z[t:t + 1, :] + gh_z)
        n = jnp.tanh(gi_n[t:t + 1, :] + r * (gh_n + b_hn))
        h = (1.0 - z) * n + z * h
        out_ref[t:t + 1, :] = h.astype(out_ref.dtype)


def _prepare_gru_params(w_ih, w_hh, b_ih, b_hh):
    """PyTorch-layout GRU params -> gate-major, kernel-friendly layout.

    w_ih: (3H, E), w_hh: (3H, H), b_ih/b_hh: (3H,), gate order [r | z | n].
    Returns wih_g (3, E, H), whh_g (3, H, H), b_g (4, 1, H) = [b_r, b_z, b_in, b_hn].
    """
    H = w_hh.shape[1]
    wih_g = w_ih.reshape(3, H, -1).transpose(0, 2, 1).astype(jnp.float32)   # (3, E, H)
    whh_g = w_hh.reshape(3, H, H).transpose(0, 2, 1).astype(jnp.float32)    # (3, H, H)
    bih_g = b_ih.reshape(3, 1, H).astype(jnp.float32)
    bhh_g = b_hh.reshape(3, 1, H).astype(jnp.float32)
    b_g = jnp.concatenate([bih_g[0:1] + bhh_g[0:1],    # b_r
                           bih_g[1:2] + bhh_g[1:2],    # b_z
                           bih_g[2:3],                 # b_in
                           bhh_g[2:3]], axis=0)        # b_hn -> (4, 1, H)
    return wih_g, whh_g, b_g


def encoder_forward(token_ids, hidden0, emb_table, w_ih, w_hh, b_ih, b_hh):
    """Run the Encoder over a token sequence with ONE pallas_call / ONE grid step.

    token_ids: (T,) int32; hidden0: (1, 1, H).
    Returns (out, new_hidden): out is (T, 1, H) (hidden state after every
    token, what torch.nn.GRU returns for the embedded sequence) and
    new_hidden is (1, 1, H) (== out[-1]).
    """
    V, E = emb_table.shape
    H = hidden0.shape[-1]
    T = int(token_ids.shape[0])

    wih_g, whh_g, b_g = _prepare_gru_params(w_ih, w_hh, b_ih, b_hh)
    toks = jnp.asarray(token_ids, jnp.int32).reshape(T)
    h0 = hidden0.reshape(1, H).astype(jnp.float32)
    emb = emb_table.astype(jnp.float32)

    grid_spec = pltpu.PrefetchScalarGridSpec(
        num_scalar_prefetch=1,
        grid=(1,),   # single step; the whole recurrence lives inside the kernel
        in_specs=[
            pl.BlockSpec((V, E), lambda i, tok: (0, 0)),          # emb table (resident)
            pl.BlockSpec((1, H), lambda i, tok: (0, 0)),          # initial hidden
            pl.BlockSpec((3, E, H), lambda i, tok: (0, 0, 0)),    # W_ih (gate-major)
            pl.BlockSpec((3, H, H), lambda i, tok: (0, 0, 0)),    # W_hh (gate-major)
            pl.BlockSpec((4, 1, H), lambda i, tok: (0, 0, 0)),    # biases
        ],
        out_specs=pl.BlockSpec((T, H), lambda i, tok: (0, 0)),
        scratch_shapes=[pltpu.VMEM((T, E), jnp.float32)],
    )

    outs = pl.pallas_call(
        gru_encoder_kernel,
        grid_spec=grid_spec,
        out_shape=jax.ShapeDtypeStruct((T, H), jnp.float32),
        compiler_params=pltpu.CompilerParams(
            dimension_semantics=("arbitrary",)),   # sequential recurrence
    )(toks, emb, h0, wih_g, whh_g, b_g)

    out_seq = outs.reshape(T, 1, H)     # (T, 1, H)
    new_hidden = out_seq[T - 1:T]       # (1, 1, H) == last hidden state
    return out_seq, new_hidden


def encoder_step(token_id, hidden, emb_table, w_ih, w_hh, b_ih, b_hh):
    """Exact analogue of Encoder.forward(input_word, hidden_state): one token."""
    tok = jnp.asarray(token_id, jnp.int32).reshape(1)
    return encoder_forward(tok, hidden, emb_table, w_ih, w_hh, b_ih, b_hh)


def reference_forward(token_ids, hidden0, emb_table, w_ih, w_hh, b_ih, b_hh):
    """Pure-JAX per-step GRU matching torch.nn.GRU (gate order r, z, n)."""
    H = hidden0.shape[-1]
    h = hidden0.reshape(1, H).astype(jnp.float32)
    outs = []
    for t in range(int(token_ids.shape[0])):
        x = emb_table[token_ids[t]].reshape(1, -1).astype(jnp.float32)
        gi = x @ w_ih.T + b_ih
        gh = h @ w_hh.T + b_hh
        r = jax.nn.sigmoid(gi[:, 0:H] + gh[:, 0:H])
        z = jax.nn.sigmoid(gi[:, H:2 * H] + gh[:, H:2 * H])
        n = jnp.tanh(gi[:, 2 * H:] + r * gh[:, 2 * H:])
        h = (1.0 - z) * n + z * h
        outs.append(h)
    out = jnp.stack(outs, axis=0)      # (T, 1, H)
    return out, h.reshape(1, 1, H)


if __name__ == "__main__":
    # Small shapes consistent with the module: vocab=50, embedding=16, hidden=32, seq=8.
    V, E, H, T = 50, 16, 32, 8

    key = jax.random.PRNGKey(0)
    k_emb, k_wih, k_whh, k_bih, k_bhh, k_tok = jax.random.split(key, 6)

    bound = 1.0 / np.sqrt(H)
    emb_table = jax.random.normal(k_emb, (V, E), jnp.float32)
    # PyTorch nn.GRU parameter layout: weight_ih_l0 (3H, E), weight_hh_l0 (3H, H).
    w_ih = jax.random.uniform(k_wih, (3 * H, E), jnp.float32, -bound, bound)
    w_hh = jax.random.uniform(k_whh, (3 * H, H), jnp.float32, -bound, bound)
    b_ih = jax.random.uniform(k_bih, (3 * H,), jnp.float32, -bound, bound)
    b_hh = jax.random.uniform(k_bhh, (3 * H,), jnp.float32, -bound, bound)

    token_ids = jax.random.randint(k_tok, (T,), 0, V, jnp.int32)
    hidden0 = jnp.zeros((1, 1, H), jnp.float32)        # Encoder.initHidden()

    # Full-sequence encoder pass (one pallas_call, one grid step, for all T tokens).
    out, new_hidden = encoder_forward(token_ids, hidden0, emb_table,
                                      w_ih, w_hh, b_ih, b_hh)
    jax.block_until_ready((out, new_hidden))

    out_ref, hid_ref = reference_forward(token_ids, hidden0, emb_table,
                                         w_ih, w_hh, b_ih, b_hh)
    np.testing.assert_allclose(np.asarray(out), np.asarray(out_ref),
                               rtol=1e-5, atol=1e-5)
    np.testing.assert_allclose(np.asarray(new_hidden), np.asarray(hid_ref),
                               rtol=1e-5, atol=1e-5)

    # Single-token call: identical semantics to Encoder.forward(input_word, hidden).
    out1, hid1 = encoder_step(jnp.int32(7), hidden0, emb_table,
                              w_ih, w_hh, b_ih, b_hh)
    jax.block_until_ready((out1, hid1))
    out1_ref, hid1_ref = reference_forward(jnp.array([7], jnp.int32), hidden0,
                                           emb_table, w_ih, w_hh, b_ih, b_hh)
    np.testing.assert_allclose(np.asarray(out1), np.asarray(out1_ref),
                               rtol=1e-5, atol=1e-5)
    np.testing.assert_allclose(np.asarray(hid1), np.asarray(hid1_ref),
                               rtol=1e-5, atol=1e-5)

    print("KERNEL_OK")
</pallas_src>

<mosaic_0001>
module attributes {stable_mosaic.version = 11 : i64} {
  func.func @gru_encoder_kernel(%arg0: i32, %arg1: memref<8xi32, #tpu.memory_space<smem>>, %arg2: memref<50x16xf32, #tpu.memory_space<vmem>>, %arg3: memref<1x32xf32, #tpu.memory_space<vmem>>, %arg4: memref<3x16x32xf32, #tpu.memory_space<vmem>>, %arg5: memref<3x32x32xf32, #tpu.memory_space<vmem>>, %arg6: memref<4x1x32xf32, #tpu.memory_space<vmem>>, %arg7: memref<8x32xf32, #tpu.memory_space<vmem>>, %arg8: memref<8x16xf32, #tpu.memory_space<vmem>>) attributes {dimension_semantics = [#tpu.dimension_semantics<arbitrary>], iteration_bounds = array<i64: 1>, scalar_prefetch = 1 : i64, scratch_operands = 1 : i64, tpu.core_type = #tpu.core_type<tc>, window_params = [{pipeline_mode = #tpu.pipeline_mode<synchronous>, transform_indices = @transform_0, window_bounds = array<i64: 50, 16>}, {pipeline_mode = #tpu.pipeline_mode<synchronous>, transform_indices = @transform_1, window_bounds = array<i64: 1, 32>}, {pipeline_mode = #tpu.pipeline_mode<synchronous>, transform_indices = @transform_2, window_bounds = array<i64: 3, 16, 32>}, {pipeline_mode = #tpu.pipeline_mode<synchronous>, transform_indices = @transform_3, window_bounds = array<i64: 3, 32, 32>}, {pipeline_mode = #tpu.pipeline_mode<synchronous>, transform_indices = @transform_4, window_bounds = array<i64: 4, 1, 32>}, {pipeline_mode = #tpu.pipeline_mode<synchronous>, transform_indices = @transform_5, window_bounds = array<i64: 8, 32>}]} {
    %c0 = arith.constant 0 : index
    %0 = memref.load %arg1[%c0] : memref<8xi32, #tpu.memory_space<smem>>
    %1 = arith.index_cast %0 : i32 to index
    %c0_0 = arith.constant 0 : index
    %2 = vector.load %arg2[%1, %c0_0] : memref<50x16xf32, #tpu.memory_space<vmem>>, vector<1x16xf32>
    %c0_1 = arith.constant 0 : index
    %c0_2 = arith.constant 0 : index
    %3 = vector.load %arg8[%c0_1, %c0_2] : memref<8x16xf32, #tpu.memory_space<vmem>>, vector<1x16xf32>
    tpu.vector_store %arg8[%c0_1, %c0_2], %2 {strides = array<i32>} : memref<8x16xf32, #tpu.memory_space<vmem>>, vector<1x16xf32>,
    %c1 = arith.constant 1 : index
    %4 = memref.load %arg1[%c1] : memref<8xi32, #tpu.memory_space<smem>>
    %5 = arith.index_cast %4 : i32 to index
    %c0_3 = arith.constant 0 : index
    %6 = vector.load %arg2[%5, %c0_3] : memref<50x16xf32, #tpu.memory_space<vmem>>, vector<1x16xf32>
    %c1_4 = arith.constant 1 : index
    %c0_5 = arith.constant 0 : index
    %7 = vector.load %arg8[%c1_4, %c0_5] : memref<8x16xf32, #tpu.memory_space<vmem>>, vector<1x16xf32>
    tpu.vector_store %arg8[%c1_4, %c0_5], %6 {strides = array<i32>} : memref<8x16xf32, #tpu.memory_space<vmem>>, vector<1x16xf32>,
    %c2 = arith.constant 2 : index
    %8 = memref.load %arg1[%c2] : memref<8xi32, #tpu.memory_space<smem>>
    %9 = arith.index_cast %8 : i32 to index
    %c0_6 = arith.constant 0 : index
    %10 = vector.load %arg2[%9, %c0_6] : memref<50x16xf32, #tpu.memory_space<vmem>>, vector<1x16xf32>
    %c2_7 = arith.constant 2 : index
    %c0_8 = arith.constant 0 : index
    %11 = vector.load %arg8[%c2_7, %c0_8] : memref<8x16xf32, #tpu.memory_space<vmem>>, vector<1x16xf32>
    tpu.vector_store %arg8[%c2_7, %c0_8], %10 {strides = array<i32>} : memref<8x16xf32, #tpu.memory_space<vmem>>, vector<1x16xf32>,
    %c3 = arith.constant 3 : index
    %12 = memref.load %arg1[%c3] : memref<8xi32, #tpu.memory_space<smem>>
    %13 = arith.index_cast %12 : i32 to index
    %c0_9 = arith.constant 0 : index
    %14 = vector.load %arg2[%13, %c0_9] : memref<50x16xf32, #tpu.memory_space<vmem>>, vector<1x16xf32>
    %c3_10 = arith.constant 3 : index
    %c0_11 = arith.constant 0 : index
    %15 = vector.load %arg8[%c3_10, %c0_11] : memref<8x16xf32, #tpu.memory_space<vmem>>, vector<1x16xf32>
    tpu.vector_store %arg8[%c3_10, %c0_11], %14 {strides = array<i32>} : memref<8x16xf32, #tpu.memory_space<vmem>>, vector<1x16xf32>,
    %c4 = arith.constant 4 : index
    %16 = memref.load %arg1[%c4] : memref<8xi32, #tpu.memory_space<smem>>
    %17 = arith.index_cast %16 : i32 to index
    %c0_12 = arith.constant 0 : index
    %18 = vector.load %arg2[%17, %c0_12] : memref<50x16xf32, #tpu.memory_space<vmem>>, vector<1x16xf32>
    %c4_13 = arith.constant 4 : index
    %c0_14 = arith.constant 0 : index
    %19 = vector.load %arg8[%c4_13, %c0_14] : memref<8x16xf32, #tpu.memory_space<vmem>>, vector<1x16xf32>
    tpu.vector_store %arg8[%c4_13, %c0_14], %18 {strides = array<i32>} : memref<8x16xf32, #tpu.memory_space<vmem>>, vector<1x16xf32>,
    %c5 = arith.constant 5 : index
    %20 = memref.load %arg1[%c5] : memref<8xi32, #tpu.memory_space<smem>>
    %21 = arith.index_cast %20 : i32 to index
    %c0_15 = arith.constant 0 : index
    %22 = vector.load %arg2[%21, %c0_15] : memref<50x16xf32, #tpu.memory_space<vmem>>, vector<1x16xf32>
    %c5_16 = arith.constant 5 : index
    %c0_17 = arith.constant 0 : index
    %23 = vector.load %arg8[%c5_16, %c0_17] : memref<8x16xf32, #tpu.memory_space<vmem>>, vector<1x16xf32>
    tpu.vector_store %arg8[%c5_16, %c0_17], %22 {strides = array<i32>} : memref<8x16xf32, #tpu.memory_space<vmem>>, vector<1x16xf32>,
    %c6 = arith.constant 6 : index
    %24 = memref.load %arg1[%c6] : memref<8xi32, #tpu.memory_space<smem>>
    %25 = arith.index_cast %24 : i32 to index
    %c0_18 = arith.constant 0 : index
    %26 = vector.load %arg2[%25, %c0_18] : memref<50x16xf32, #tpu.memory_space<vmem>>, vector<1x16xf32>
    %c6_19 = arith.constant 6 : index
    %c0_20 = arith.constant 0 : index
    %27 = vector.load %arg8[%c6_19, %c0_20] : memref<8x16xf32, #tpu.memory_space<vmem>>, vector<1x16xf32>
    tpu.vector_store %arg8[%c6_19, %c0_20], %26 {strides = array<i32>} : memref<8x16xf32, #tpu.memory_space<vmem>>, vector<1x16xf32>,
    %c7 = arith.constant 7 : index
    %28 = memref.load %arg1[%c7] : memref<8xi32, #tpu.memory_space<smem>>
    %29 = arith.index_cast %28 : i32 to index
    %c0_21 = arith.constant 0 : index
    %30 = vector.load %arg2[%29, %c0_21] : memref<50x16xf32, #tpu.memory_space<vmem>>, vector<1x16xf32>
    %c7_22 = arith.constant 7 : index
    %c0_23 = arith.constant 0 : index
    %31 = vector.load %arg8[%c7_22, %c0_23] : memref<8x16xf32, #tpu.memory_space<vmem>>, vector<1x16xf32>
    tpu.vector_store %arg8[%c7_22, %c0_23], %30 {strides = array<i32>} : memref<8x16xf32, #tpu.memory_space<vmem>>, vector<1x16xf32>,
    %c0_24 = arith.constant 0 : index
    %c0_25 = arith.constant 0 : index
    %32 = vector.load %arg8[%c0_24, %c0_25] : memref<8x16xf32, #tpu.memory_space<vmem>>, vector<8x16xf32>
    %c0_26 = arith.constant 0 : index
    %c0_27 = arith.constant 0 : index
    %c0_28 = arith.constant 0 : index
    %33 = vector.load %arg4[%c0_26, %c0_27, %c0_28] : memref<3x16x32xf32, #tpu.memory_space<vmem>>, vector<1x16x32xf32>
    %34 = vector.shape_cast %33 : vector<1x16x32xf32> to vector<16x32xf32>
    %cst = arith.constant dense<0.000000e+00> : vector<8x32xf32>
    %35 = tpu.matmul %32, %34, %cst {dimension_numbers = #tpu.dot_dimension_numbers<[1], [0], [0], [1], [0, 0, 1, 1], [], []>} : vector<8x16xf32>, vector<16x32xf32>, vector<8x32xf32> -> vector<8x32xf32>
    %c0_29 = arith.constant 0 : index
    %c0_30 = arith.constant 0 : index
    %c0_31 = arith.constant 0 : index
    %36 = vector.load %arg6[%c0_29, %c0_30, %c0_31] : memref<4x1x32xf32, #tpu.memory_space<vmem>>, vector<1x1x32xf32>
    %37 = vector.shape_cast %36 : vector<1x1x32xf32> to vector<1x32xf32>
    %38 = vector.broadcast %37 : vector<1x32xf32> to vector<8x32xf32>
    %39 = arith.addf %35, %38 : vector<8x32xf32>
    %c1_32 = arith.constant 1 : index
    %c0_33 = arith.constant 0 : index
    %c0_34 = arith.constant 0 : index
    %40 = vector.load %arg4[%c1_32, %c0_33, %c0_34] : memref<3x16x32xf32, #tpu.memory_space<vmem>>, vector<1x16x32xf32>
    %41 = vector.shape_cast %40 : vector<1x16x32xf32> to vector<16x32xf32>
    %cst_35 = arith.constant dense<0.000000e+00> : vector<8x32xf32>
    %42 = tpu.matmul %32, %41, %cst_35 {dimension_numbers = #tpu.dot_dimension_numbers<[1], [0], [0], [1], [0, 0, 1, 1], [], []>} : vector<8x16xf32>, vector<16x32xf32>, vector<8x32xf32> -> vector<8x32xf32>
    %c1_36 = arith.constant 1 : index
    %c0_37 = arith.constant 0 : index
    %c0_38 = arith.constant 0 : index
    %43 = vector.load %arg6[%c1_36, %c0_37, %c0_38] : memref<4x1x32xf32, #tpu.memory_space<vmem>>, vector<1x1x32xf32>
    %44 = vector.shape_cast %43 : vector<1x1x32xf32> to vector<1x32xf32>
    %45 = vector.broadcast %44 : vector<1x32xf32> to vector<8x32xf32>
    %46 = arith.addf %42, %45 : vector<8x32xf32>
    %c2_39 = arith.constant 2 : index
    %c0_40 = arith.constant 0 : index
    %c0_41 = arith.constant 0 : index
    %47 = vector.load %arg4[%c2_39, %c0_40, %c0_41] : memref<3x16x32xf32, #tpu.memory_space<vmem>>, vector<1x16x32xf32>
    %48 = vector.shape_cast %47 : vector<1x16x32xf32> to vector<16x32xf32>
    %cst_42 = arith.constant dense<0.000000e+00> : vector<8x32xf32>
    %49 = tpu.matmul %32, %48, %cst_42 {dimension_numbers = #tpu.dot_dimension_numbers<[1], [0], [0], [1], [0, 0, 1, 1], [], []>} : vector<8x16xf32>, vector<16x32xf32>, vector<8x32xf32> -> vector<8x32xf32>
    %c2_43 = arith.constant 2 : index
    %c0_44 = arith.constant 0 : index
    %c0_45 = arith.constant 0 : index
    %50 = vector.load %arg6[%c2_43, %c0_44, %c0_45] : memref<4x1x32xf32, #tpu.memory_space<vmem>>, vector<1x1x32xf32>
    %51 = vector.shape_cast %50 : vector<1x1x32xf32> to vector<1x32xf32>
    %52 = vector.broadcast %51 : vector<1x32xf32> to vector<8x32xf32>
    %53 = arith.addf %49, %52 : vector<8x32xf32>
    %c0_46 = arith.constant 0 : index
    %c0_47 = arith.constant 0 : index
    %c0_48 = arith.constant 0 : index
    %54 = vector.load %arg5[%c0_46, %c0_47, %c0_48] : memref<3x32x32xf32, #tpu.memory_space<vmem>>, vector<1x32x32xf32>
    %55 = vector.shape_cast %54 : vector<1x32x32xf32> to vector<32x32xf32>
    %c1_49 = arith.constant 1 : index
    %c0_50 = arith.constant 0 : index
    %c0_51 = arith.constant 0 : index
    %56 = vector.load %arg5[%c1_49, %c0_50, %c0_51] : memref<3x32x32xf32, #tpu.memory_space<vmem>>, vector<1x32x32xf32>
    %57 = vector.shape_cast %56 : vector<1x32x32xf32> to vector<32x32xf32>
    %c2_52 = arith.constant 2 : index
    %c0_53 = arith.constant 0 : index
    %c0_54 = arith.constant 0 : index
    %58 = vector.load %arg5[%c2_52, %c0_53, %c0_54] : memref<3x32x32xf32, #tpu.memory_space<vmem>>, vector<1x32x32xf32>
    %59 = vector.shape_cast %58 : vector<1x32x32xf32> to vector<32x32xf32>
    %c3_55 = arith.constant 3 : index
    %c0_56 = arith.constant 0 : index
    %c0_57 = arith.constant 0 : index
    %60 = vector.load %arg6[%c3_55, %c0_56, %c0_57] : memref<4x1x32xf32, #tpu.memory_space<vmem>>, vector<1x1x32xf32>
    %61 = vector.shape_cast %60 : vector<1x1x32xf32> to vector<1x32xf32>
    %c0_58 = arith.constant 0 : index
    %c0_59 = arith.constant 0 : index
    %62 = vector.load %arg3[%c0_58, %c0_59] : memref<1x32xf32, #tpu.memory_space<vmem>>, vector<1x32xf32>
    %cst_60 = arith.constant dense<0.000000e+00> : vector<1x32xf32>
    %63 = tpu.matmul %62, %55, %cst_60 {dimension_numbers = #tpu.dot_dimension_numbers<[1], [0], [0], [1], [0, 0, 1, 1], [], []>} : vector<1x32xf32>, vector<32x32xf32>, vector<1x32xf32> -> vector<1x32xf32>
    %cst_61 = arith.constant dense<0.000000e+00> : vector<1x32xf32>
    %64 = tpu.matmul %62, %57, %cst_61 {dimension_numbers = #tpu.dot_dimension_numbers<[1], [0], [0], [1], [0, 0, 1, 1], [], []>} : vector<1x32xf32>, vector<32x32xf32>, vector<1x32xf32> -> vector<1x32xf32>
    %cst_62 = arith.constant dense<0.000000e+00> : vector<1x32xf32>
    %65 = tpu.matmul %62, %59, %cst_62 {dimension_numbers = #tpu.dot_dimension_numbers<[1], [0], [0], [1], [0, 0, 1, 1], [], []>} : vector<1x32xf32>, vector<32x32xf32>, vector<1x32xf32> -> vector<1x32xf32>
    %66 = vector.extract_strided_slice %39 {offsets = [0, 0], sizes = [1, 32], strides = [1, 1]} : vector<8x32xf32> to vector<1x32xf32>
    %67 = arith.addf %66, %63 : vector<1x32xf32>
    %68 = arith.negf %67 : vector<1x32xf32>
    %69 = math.exp %68 : vector<1x32xf32>
    %cst_63 = arith.constant 1.000000e+00 : f32
    %70 = vector.broadcast %cst_63 : f32 to vector<1x32xf32>
    %71 = arith.addf %70, %69 : vector<1x32xf32>
    %72 = arith.divf %70, %71 : vector<1x32xf32>
    %73 = vector.extract_strided_slice %46 {offsets = [0, 0], sizes = [1, 32], strides = [1, 1]} : vector<8x32xf32> to vector<1x32xf32>
    %74 = arith.addf %73, %64 : vector<1x32xf32>
    %75 = arith.negf %74 : vector<1x32xf32>
    %76 = math.exp %75 : vector<1x32xf32>
    %cst_64 = arith.constant 1.000000e+00 : f32
    %77 = vector.broadcast %cst_64 : f32 to vector<1x32xf32>
    %78 = arith.addf %77, %76 : vector<1x32xf32>
    %79 = arith.divf %77, %78 : vector<1x32xf32>
    %80 = vector.extract_strided_slice %53 {offsets = [0, 0], sizes = [1, 32], strides = [1, 1]} : vector<8x32xf32> to vector<1x32xf32>
    %81 = arith.addf %65, %61 : vector<1x32xf32>
    %82 = arith.mulf %72, %81 : vector<1x32xf32>
    %83 = arith.addf %80, %82 : vector<1x32xf32>
    %84 = math.tanh %83 : vector<1x32xf32>
    %cst_65 = arith.constant 1.000000e+00 : f32
    %85 = vector.broadcast %cst_65 : f32 to vector<1x32xf32>
    %86 = arith.subf %85, %79 : vector<1x32xf32>
    %87 = arith.mulf %86, %84 : vector<1x32xf32>
    %88 = arith.mulf %79, %62 : vector<1x32xf32>
    %89 = arith.addf %87, %88 : vector<1x32xf32>
    %c0_66 = arith.constant 0 : index
    %c0_67 = arith.constant 0 : index
    %90 = vector.load %arg7[%c0_66, %c0_67] : memref<8x32xf32, #tpu.memory_space<vmem>>, vector<1x32xf32>
    tpu.vector_store %arg7[%c0_66, %c0_67], %89 {strides = array<i32>} : memref<8x32xf32, #tpu.memory_space<vmem>>, vector<1x32xf32>,
    %cst_68 = arith.constant dense<0.000000e+00> : vector<1x32xf32>
    %91 = tpu.matmul %89, %55, %cst_68 {dimension_numbers = #tpu.dot_dimension_numbers<[1], [0], [0], [1], [0, 0, 1, 1], [], []>} : vector<1x32xf32>, vector<32x32xf32>, vector<1x32xf32> -> vector<1x32xf32>
    %cst_69 = arith.constant dense<0.000000e+00> : vector<1x32xf32>
    %92 = tpu.matmul %89, %57, %cst_69 {dimension_numbers = #tpu.dot_dimension_numbers<[1], [0], [0], [1], [0, 0, 1, 1], [], []>} : vector<1x32xf32>, vector<32x32xf32>, vector<1x32xf32> -> vector<1x32xf32>
    %cst_70 = arith.constant dense<0.000000e+00> : vector<1x32xf32>
    %93 = tpu.matmul %89, %59, %cst_70 {dimension_numbers = #tpu.dot_dimension_numbers<[1], [0], [0], [1], [0, 0, 1, 1], [], []>} : vector<1x32xf32>, vector<32x32xf32>, vector<1x32xf32> -> vector<1x32xf32>
    %94 = vector.extract_strided_slice %39 {offsets = [1, 0], sizes = [1, 32], strides = [1, 1]} : vector<8x32xf32> to vector<1x32xf32>
    %95 = arith.addf %94, %91 : vector<1x32xf32>
    %96 = arith.negf %95 : vector<1x32xf32>
    %97 = math.exp %96 : vector<1x32xf32>
    %cst_71 = arith.constant 1.000000e+00 : f32
    %98 = vector.broadcast %cst_71 : f32 to vector<1x32xf32>
    %99 = arith.addf %98, %97 : vector<1x32xf32>
    %100 = arith.divf %98, %99 : vector<1x32xf32>
    %101 = vector.extract_strided_slice %46 {offsets = [1, 0], sizes = [1, 32], strides = [1, 1]} : vector<8x32xf32> to vector<1x32xf32>
    %102 = arith.addf %101, %92 : vector<1x32xf32>
    %103 = arith.negf %102 : vector<1x32xf32>
    %104 = math.exp %103 : vector<1x32xf32>
    %cst_72 = arith.constant 1.000000e+00 : f32
    %105 = vector.broadcast %cst_72 : f32 to vector<1x32xf32>
    %106 = arith.addf %105, %104 : vector<1x32xf32>
    %107 = arith.divf %105, %106 : vector<1x32xf32>
    %108 = vector.extract_strided_slice %53 {offsets = [1, 0], sizes = [1, 32], strides = [1, 1]} : vector<8x32xf32> to vector<1x32xf32>
    %109 = arith.addf %93, %61 : vector<1x32xf32>
    %110 = arith.mulf %100, %109 : vector<1x32xf32>
    %111 = arith.addf %108, %110 : vector<1x32xf32>
    %112 = math.tanh %111 : vector<1x32xf32>
    %cst_73 = arith.constant 1.000000e+00 : f32
    %113 = vector.broadcast %cst_73 : f32 to vector<1x32xf32>
    %114 = arith.subf %113, %107 : vector<1x32xf32>
    %115 = arith.mulf %114, %112 : vector<1x32xf32>
    %116 = arith.mulf %107, %89 : vector<1x32xf32>
    %117 = arith.addf %115, %116 : vector<1x32xf32>
    %c1_74 = arith.constant 1 : index
    %c0_75 = arith.constant 0 : index
    %118 = vector.load %arg7[%c1_74, %c0_75] : memref<8x32xf32, #tpu.memory_space<vmem>>, vector<1x32xf32>
    tpu.vector_store %arg7[%c1_74, %c0_75], %117 {strides = array<i32>} : memref<8x32xf32, #tpu.memory_space<vmem>>, vector<1x32xf32>,
    %cst_76 = arith.constant dense<0.000000e+00> : vector<1x32xf32>
    %119 = tpu.matmul %117, %55, %cst_76 {dimension_numbers = #tpu.dot_dimension_numbers<[1], [0], [0], [1], [0, 0, 1, 1], [], []>} : vector<1x32xf32>, vector<32x32xf32>, vector<1x32xf32> -> vector<1x32xf32>
    %cst_77 = arith.constant dense<0.000000e+00> : vector<1x32xf32>
    %120 = tpu.matmul %117, %57, %cst_77 {dimension_numbers = #tpu.dot_dimension_numbers<[1], [0], [0], [1], [0, 0, 1, 1], [], []>} : vector<1x32xf32>, vector<32x32xf32>, vector<1x32xf32> -> vector<1x32xf32>
    %cst_78 = arith.constant dense<0.000000e+00> : vector<1x32xf32>
    %121 = tpu.matmul %117, %59, %cst_78 {dimension_numbers = #tpu.dot_dimension_numbers<[1], [0], [0], [1], [0, 0, 1, 1], [], []>} : vector<1x32xf32>, vector<32x32xf32>, vector<1x32xf32> -> vector<1x32xf32>
    %122 = vector.extract_strided_slice %39 {offsets = [2, 0], sizes = [1, 32], strides = [1, 1]} : vector<8x32xf32> to vector<1x32xf32>
    %123 = arith.addf %122, %119 : vector<1x32xf32>
    %124 = arith.negf %123 : vector<1x32xf32>
    %125 = math.exp %124 : vector<1x32xf32>
    %cst_79 = arith.constant 1.000000e+00 : f32
    %126 = vector.broadcast %cst_79 : f32 to vector<1x32xf32>
    %127 = arith.addf %126, %125 : vector<1x32xf32>
    %128 = arith.divf %126, %127 : vector<1x32xf32>
    %129 = vector.extract_strided_slice %46 {offsets = [2, 0], sizes = [1, 32], strides = [1, 1]} : vector<8x32xf32> to vector<1x32xf32>
    %130 = arith.addf %129, %120 : vector<1x32xf32>
    %131 = arith.negf %130 : vector<1x32xf32>
    %132 = math.exp %131 : vector<1x32xf32>
    %cst_80 = arith.constant 1.000000e+00 : f32
    %133 = vector.broadcast %cst_80 : f32 to vector<1x32xf32>
    %134 = arith.addf %133, %132 : vector<1x32xf32>
    %135 = arith.divf %133, %134 : vector<1x32xf32>
    %136 = vector.extract_strided_slice %53 {offsets = [2, 0], sizes = [1, 32], strides = [1, 1]} : vector<8x32xf32> to vector<1x32xf32>
    %137 = arith.addf %121, %61 : vector<1x32xf32>
    %138 = arith.mulf %128, %137 : vector<1x32xf32>
    %139 = arith.addf %136, %138 : vector<1x32xf32>
    %140 = math.tanh %139 : vector<1x32xf32>
    %cst_81 = arith.constant 1.000000e+00 : f32
    %141 = vector.broadcast %cst_81 : f32 to vector<1x32xf32>
    %142 = arith.subf %141, %135 : vector<1x32xf32>
    %143 = arith.mulf %142, %140 : vector<1x32xf32>
    %144 = arith.mulf %135, %117 : vector<1x32xf32>
    %145 = arith.addf %143, %144 : vector<1x32xf32>
    %c2_82 = arith.constant 2 : index
    %c0_83 = arith.constant 0 : index
    %146 = vector.load %arg7[%c2_82, %c0_83] : memref<8x32xf32, #tpu.memory_space<vmem>>, vector<1x32xf32>
    tpu.vector_store %arg7[%c2_82, %c0_83], %145 {strides = array<i32>} : memref<8x32xf32, #tpu.memory_space<vmem>>, vector<1x32xf32>,
    %cst_84 = arith.constant dense<0.000000e+00> : vector<1x32xf32>
    %147 = tpu.matmul %145, %55, %cst_84 {dimension_numbers = #tpu.dot_dimension_numbers<[1], [0], [0], [1], [0, 0, 1, 1], [], []>} : vector<1x32xf32>, vector<32x32xf32>, vector<1x32xf32> -> vector<1x32xf32>
    %cst_85 = arith.constant dense<0.000000e+00> : vector<1x32xf32>
    %148 = tpu.matmul %145, %57, %cst_85 {dimension_numbers = #tpu.dot_dimension_numbers<[1], [0], [0], [1], [0, 0, 1, 1], [], []>} : vector<1x32xf32>, vector<32x32xf32>, vector<1x32xf32> -> vector<1x32xf32>
    %cst_86 = arith.constant dense<0.000000e+00> : vector<1x32xf32>
    %149 = tpu.matmul %145, %59, %cst_86 {dimension_numbers = #tpu.dot_dimension_numbers<[1], [0], [0], [1], [0, 0, 1, 1], [], []>} : vector<1x32xf32>, vector<32x32xf32>, vector<1x32xf32> -> vector<1x32xf32>
    %150 = vector.extract_strided_slice %39 {offsets = [3, 0], sizes = [1, 32], strides = [1, 1]} : vector<8x32xf32> to vector<1x32xf32>
    %151 = arith.addf %150, %147 : vector<1x32xf32>
    %152 = arith.negf %151 : vector<1x32xf32>
    %153 = math.exp %152 : vector<1x32xf32>
    %cst_87 = arith.constant 1.000000e+00 : f32
    %154 = vector.broadcast %cst_87 : f32 to vector<1x32xf32>
    %155 = arith.addf %154, %153 : vector<1x32xf32>
    %156 = arith.divf %154, %155 : vector<1x32xf32>
    %157 = vector.extract_strided_slice %46 {offsets = [3, 0], sizes = [1, 32], strides = [1, 1]} : vector<8x32xf32> to vector<1x32xf32>
    %158 = arith.addf %157, %148 : vector<1x32xf32>
    %159 = arith.negf %158 : vector<1x32xf32>
    %160 = math.exp %159 : vector<1x32xf32>
    %cst_88 = arith.constant 1.000000e+00 : f32
    %161 = vector.broadcast %cst_88 : f32 to vector<1x32xf32>
    %162 = arith.addf %161, %160 : vector<1x32xf32>
    %163 = arith.divf %161, %162 : vector<1x32xf32>
    %164 = vector.extract_strided_slice %53 {offsets = [3, 0], sizes = [1, 32], strides = [1, 1]} : vector<8x32xf32> to vector<1x32xf32>
    %165 = arith.addf %149, %61 : vector<1x32xf32>
    %166 = arith.mulf %156, %165 : vector<1x32xf32>
    %167 = arith.addf %164, %166 : vector<1x32xf32>
    %168 = math.tanh %167 : vector<1x32xf32>
    %cst_89 = arith.constant 1.000000e+00 : f32
    %169 = vector.broadcast %cst_89 : f32 to vector<1x32xf32>
    %170 = arith.subf %169, %163 : vector<1x32xf32>
    %171 = arith.mulf %170, %168 : vector<1x32xf32>
    %172 = arith.mulf %163, %145 : vector<1x32xf32>
    %173 = arith.addf %171, %172 : vector<1x32xf32>
    %c3_90 = arith.constant 3 : index
    %c0_91 = arith.constant 0 : index
    %174 = vector.load %arg7[%c3_90, %c0_91] : memref<8x32xf32, #tpu.memory_space<vmem>>, vector<1x32xf32>
    tpu.vector_store %arg7[%c3_90, %c0_91], %173 {strides = array<i32>} : memref<8x32xf32, #tpu.memory_space<vmem>>, vector<1x32xf32>,
    %cst_92 = arith.constant dense<0.000000e+00> : vector<1x32xf32>
    %175 = tpu.matmul %173, %55, %cst_92 {dimension_numbers = #tpu.dot_dimension_numbers<[1], [0], [0], [1], [0, 0, 1, 1], [], []>} : vector<1x32xf32>, vector<32x32xf32>, vector<1x32xf32> -> vector<1x32xf32>
    %cst_93 = arith.constant dense<0.000000e+00> : vector<1x32xf32>
    %176 = tpu.matmul %173, %57, %cst_93 {dimension_numbers = #tpu.dot_dimension_numbers<[1], [0], [0], [1], [0, 0, 1, 1], [], []>} : vector<1x32xf32>, vector<32x32xf32>, vector<1x32xf32> -> vector<1x32xf32>
    %cst_94 = arith.constant dense<0.000000e+00> : vector<1x32xf32>
    %177 = tpu.matmul %173, %59, %cst_94 {dimension_numbers = #tpu.dot_dimension_numbers<[1], [0], [0], [1], [0, 0, 1, 1], [], []>} : vector<1x32xf32>, vector<32x32xf32>, vector<1x32xf32> -> vector<1x32xf32>
    %178 = vector.extract_strided_slice %39 {offsets = [4, 0], sizes = [1, 32], strides = [1, 1]} : vector<8x32xf32> to vector<1x32xf32>
    %179 = arith.addf %178, %175 : vector<1x32xf32>
    %180 = arith.negf %179 : vector<1x32xf32>
    %181 = math.exp %180 : vector<1x32xf32>
    %cst_95 = arith.constant 1.000000e+00 : f32
    %182 = vector.broadcast %cst_95 : f32 to vector<1x32xf32>
    %183 = arith.addf %182, %181 : vector<1x32xf32>
    %184 = arith.divf %182, %183 : vector<1x32xf32>
    %185 = vector.extract_strided_slice %46 {offsets = [4, 0], sizes = [1, 32], strides = [1, 1]} : vector<8x32xf32> to vector<1x32xf32>
    %186 = arith.addf %185, %176 : vector<1x32xf32>
    %187 = arith.negf %186 : vector<1x32xf32>
    %188 = math.exp %187 : vector<1x32xf32>
    %cst_96 = arith.constant 1.000000e+00 : f32
    %189 = vector.broadcast %cst_96 : f32 to vector<1x32xf32>
    %190 = arith.addf %189, %188 : vector<1x32xf32>
    %191 = arith.divf %189, %190 : vector<1x32xf32>
    %192 = vector.extract_strided_slice %53 {offsets = [4, 0], sizes = [1, 32], strides = [1, 1]} : vector<8x32xf32> to vector<1x32xf32>
    %193 = arith.addf %177, %61 : vector<1x32xf32>
    %194 = arith.mulf %184, %193 : vector<1x32xf32>
    %195 = arith.addf %192, %194 : vector<1x32xf32>
    %196 = math.tanh %195 : vector<1x32xf32>
    %cst_97 = arith.constant 1.000000e+00 : f32
    %197 = vector.broadcast %cst_97 : f32 to vector<1x32xf32>
    %198 = arith.subf %197, %191 : vector<1x32xf32>
    %199 = arith.mulf %198, %196 : vector<1x32xf32>
    %200 = arith.mulf %191, %173 : vector<1x32xf32>
    %201 = arith.addf %199, %200 : vector<1x32xf32>
    %c4_98 = arith.constant 4 : index
    %c0_99 = arith.constant 0 : index
    %202 = vector.load %arg7[%c4_98, %c0_99] : memref<8x32xf32, #tpu.memory_space<vmem>>, vector<1x32xf32>
    tpu.vector_store %arg7[%c4_98, %c0_99], %201 {strides = array<i32>} : memref<8x32xf32, #tpu.memory_space<vmem>>, vector<1x32xf32>,
    %cst_100 = arith.constant dense<0.000000e+00> : vector<1x32xf32>
    %203 = tpu.matmul %201, %55, %cst_100 {dimension_numbers = #tpu.dot_dimension_numbers<[1], [0], [0], [1], [0, 0, 1, 1], [], []>} : vector<1x32xf32>, vector<32x32xf32>, vector<1x32xf32> -> vector<1x32xf32>
    %cst_101 = arith.constant dense<0.000000e+00> : vector<1x32xf32>
    %204 = tpu.matmul %201, %57, %cst_101 {dimension_numbers = #tpu.dot_dimension_numbers<[1], [0], [0], [1], [0, 0, 1, 1], [], []>} : vector<1x32xf32>, vector<32x32xf32>, vector<1x32xf32> -> vector<1x32xf32>
    %cst_102 = arith.constant dense<0.000000e+00> : vector<1x32xf32>
    %205 = tpu.matmul %201, %59, %cst_102 {dimension_numbers = #tpu.dot_dimension_numbers<[1], [0], [0], [1], [0, 0, 1, 1], [], []>} : vector<1x32xf32>, vector<32x32xf32>, vector<1x32xf32> -> vector<1x32xf32>
    %206 = vector.extract_strided_slice %39 {offsets = [5, 0], sizes = [1, 32], strides = [1, 1]} : vector<8x32xf32> to vector<1x32xf32>
    %207 = arith.addf %206, %203 : vector<1x32xf32>
    %208 = arith.negf %207 : vector<1x32xf32>
    %209 = math.exp %208 : vector<1x32xf32>
    %cst_103 = arith.constant 1.000000e+00 : f32
    %210 = vector.broadcast %cst_103 : f32 to vector<1x32xf32>
    %211 = arith.addf %210, %209 : vector<1x32xf32>
    %212 = arith.divf %210, %211 : vector<1x32xf32>
    %213 = vector.extract_strided_slice %46 {offsets = [5, 0], sizes = [1, 32], strides = [1, 1]} : vector<8x32xf32> to vector<1x32xf32>
    %214 = arith.addf %213, %204 : vector<1x32xf32>
    %215 = arith.negf %214 : vector<1x32xf32>
    %216 = math.exp %215 : vector<1x32xf32>
    %cst_104 = arith.constant 1.000000e+00 : f32
    %217 = vector.broadcast %cst_104 : f32 to vector<1x32xf32>
    %218 = arith.addf %217, %216 : vector<1x32xf32>
    %219 = arith.divf %217, %218 : vector<1x32xf32>
    %220 = vector.extract_strided_slice %53 {offsets = [5, 0], sizes = [1, 32], strides = [1, 1]} : vector<8x32xf32> to vector<1x32xf32>
    %221 = arith.addf %205, %61 : vector<1x32xf32>
    %222 = arith.mulf %212, %221 : vector<1x32xf32>
    %223 = arith.addf %220, %222 : vector<1x32xf32>
    %224 = math.tanh %223 : vector<1x32xf32>
    %cst_105 = arith.constant 1.000000e+00 : f32
    %225 = vector.broadcast %cst_105 : f32 to vector<1x32xf32>
    %226 = arith.subf %225, %219 : vector<1x32xf32>
    %227 = arith.mulf %226, %224 : vector<1x32xf32>
    %228 = arith.mulf %219, %201 : vector<1x32xf32>
    %229 = arith.addf %227, %228 : vector<1x32xf32>
    %c5_106 = arith.constant 5 : index
    %c0_107 = arith.constant 0 : index
    %230 = vector.load %arg7[%c5_106, %c0_107] : memref<8x32xf32, #tpu.memory_space<vmem>>, vector<1x32xf32>
    tpu.vector_store %arg7[%c5_106, %c0_107], %229 {strides = array<i32>} : memref<8x32xf32, #tpu.memory_space<vmem>>, vector<1x32xf32>,
    %cst_108 = arith.constant dense<0.000000e+00> : vector<1x32xf32>
    %231 = tpu.matmul %229, %55, %cst_108 {dimension_numbers = #tpu.dot_dimension_numbers<[1], [0], [0], [1], [0, 0, 1, 1], [], []>} : vector<1x32xf32>, vector<32x32xf32>, vector<1x32xf32> -> vector<1x32xf32>
    %cst_109 = arith.constant dense<0.000000e+00> : vector<1x32xf32>
    %232 = tpu.matmul %229, %57, %cst_109 {dimension_numbers = #tpu.dot_dimension_numbers<[1], [0], [0], [1], [0, 0, 1, 1], [], []>} : vector<1x32xf32>, vector<32x32xf32>, vector<1x32xf32> -> vector<1x32xf32>
    %cst_110 = arith.constant dense<0.000000e+00> : vector<1x32xf32>
    %233 = tpu.matmul %229, %59, %cst_110 {dimension_numbers = #tpu.dot_dimension_numbers<[1], [0], [0], [1], [0, 0, 1, 1], [], []>} : vector<1x32xf32>, vector<32x32xf32>, vector<1x32xf32> -> vector<1x32xf32>
    %234 = vector.extract_strided_slice %39 {offsets = [6, 0], sizes = [1, 32], strides = [1, 1]} : vector<8x32xf32> to vector<1x32xf32>
    %235 = arith.addf %234, %231 : vector<1x32xf32>
    %236 = arith.negf %235 : vector<1x32xf32>
    %237 = math.exp %236 : vector<1x32xf32>
    %cst_111 = arith.constant 1.000000e+00 : f32
    %238 = vector.broadcast %cst_111 : f32 to vector<1x32xf32>
    %239 = arith.addf %238, %237 : vector<1x32xf32>
    %240 = arith.divf %238, %239 : vector<1x32xf32>
    %241 = vector.extract_strided_slice %46 {offsets = [6, 0], sizes = [1, 32], strides = [1, 1]} : vector<8x32xf32> to vector<1x32xf32>
    %242 = arith.addf %241, %232 : vector<1x32xf32>
    %243 = arith.negf %242 : vector<1x32xf32>
    %244 = math.exp %243 : vector<1x32xf32>
    %cst_112 = arith.constant 1.000000e+00 : f32
    %245 = vector.broadcast %cst_112 : f32 to vector<1x32xf32>
    %246 = arith.addf %245, %244 : vector<1x32xf32>
    %247 = arith.divf %245, %246 : vector<1x32xf32>
    %248 = vector.extract_strided_slice %53 {offsets = [6, 0], sizes = [1, 32], strides = [1, 1]} : vector<8x32xf32> to vector<1x32xf32>
    %249 = arith.addf %233, %61 : vector<1x32xf32>
    %250 = arith.mulf %240, %249 : vector<1x32xf32>
    %251 = arith.addf %248, %250 : vector<1x32xf32>
    %252 = math.tanh %251 : vector<1x32xf32>
    %cst_113 = arith.constant 1.000000e+00 : f32
    %253 = vector.broadcast %cst_113 : f32 to vector<1x32xf32>
    %254 = arith.subf %253, %247 : vector<1x32xf32>
    %255 = arith.mulf %254, %252 : vector<1x32xf32>
    %256 = arith.mulf %247, %229 : vector<1x32xf32>
    %257 = arith.addf %255, %256 : vector<1x32xf32>
    %c6_114 = arith.constant 6 : index
    %c0_115 = arith.constant 0 : index
    %258 = vector.load %arg7[%c6_114, %c0_115] : memref<8x32xf32, #tpu.memory_space<vmem>>, vector<1x32xf32>
    tpu.vector_store %arg7[%c6_114, %c0_115], %257 {strides = array<i32>} : memref<8x32xf32, #tpu.memory_space<vmem>>, vector<1x32xf32>,
    %cst_116 = arith.constant dense<0.000000e+00> : vector<1x32xf32>
    %259 = tpu.matmul %257, %55, %cst_116 {dimension_numbers = #tpu.dot_dimension_numbers<[1], [0], [0], [1], [0, 0, 1, 1], [], []>} : vector<1x32xf32>, vector<32x32xf32>, vector<1x32xf32> -> vector<1x32xf32>
    %cst_117 = arith.constant dense<0.000000e+00> : vector<1x32xf32>
    %260 = tpu.matmul %257, %57, %cst_117 {dimension_numbers = #tpu.dot_dimension_numbers<[1], [0], [0], [1], [0, 0, 1, 1], [], []>} : vector<1x32xf32>, vector<32x32xf32>, vector<1x32xf32> -> vector<1x32xf32>
    %cst_118 = arith.constant dense<0.000000e+00> : vector<1x32xf32>
    %261 = tpu.matmul %257, %59, %cst_118 {dimension_numbers = #tpu.dot_dimension_numbers<[1], [0], [0], [1], [0, 0, 1, 1], [], []>} : vector<1x32xf32>, vector<32x32xf32>, vector<1x32xf32> -> vector<1x32xf32>
    %262 = vector.extract_strided_slice %39 {offsets = [7, 0], sizes = [1, 32], strides = [1, 1]} : vector<8x32xf32> to vector<1x32xf32>
    %263 = arith.addf %262, %259 : vector<1x32xf32>
    %264 = arith.negf %263 : vector<1x32xf32>
    %265 = math.exp %264 : vector<1x32xf32>
    %cst_119 = arith.constant 1.000000e+00 : f32
    %266 = vector.broadcast %cst_119 : f32 to vector<1x32xf32>
    %267 = arith.addf %266, %265 : vector<1x32xf32>
    %268 = arith.divf %266, %267 : vector<1x32xf32>
    %269 = vector.extract_strided_slice %46 {offsets = [7, 0], sizes = [1, 32], strides = [1, 1]} : vector<8x32xf32> to vector<1x32xf32>
    %270 = arith.addf %269, %260 : vector<1x32xf32>
    %271 = arith.negf %270 : vector<1x32xf32>
    %272 = math.exp %271 : vector<1x32xf32>
    %cst_120 = arith.constant 1.000000e+00 : f32
    %273 = vector.broadcast %cst_120 : f32 to vector<1x32xf32>
    %274 = arith.addf %273, %272 : vector<1x32xf32>
    %275 = arith.divf %273, %274 : vector<1x32xf32>
    %276 = vector.extract_strided_slice %53 {offsets = [7, 0], sizes = [1, 32], strides = [1, 1]} : vector<8x32xf32> to vector<1x32xf32>
    %277 = arith.addf %261, %61 : vector<1x32xf32>
    %278 = arith.mulf %268, %277 : vector<1x32xf32>
    %279 = arith.addf %276, %278 : vector<1x32xf32>
    %280 = math.tanh %279 : vector<1x32xf32>
    %cst_121 = arith.constant 1.000000e+00 : f32
    %281 = vector.broadcast %cst_121 : f32 to vector<1x32xf32>
    %282 = arith.subf %281, %275 : vector<1x32xf32>
    %283 = arith.mulf %282, %280 : vector<1x32xf32>
    %284 = arith.mulf %275, %257 : vector<1x32xf32>
    %285 = arith.addf %283, %284 : vector<1x32xf32>
    %c7_122 = arith.constant 7 : index
    %c0_123 = arith.constant 0 : index
    %286 = vector.load %arg7[%c7_122, %c0_123] : memref<8x32xf32, #tpu.memory_space<vmem>>, vector<1x32xf32>
    tpu.vector_store %arg7[%c7_122, %c0_123], %285 {strides = array<i32>} : memref<8x32xf32, #tpu.memory_space<vmem>>, vector<1x32xf32>,
    return
  }
  func.func @transform_0(%arg0: i32, %arg1: memref<8xi32, #tpu.memory_space<smem>>) -> (i32, i32) {
    %c0_i32 = arith.constant 0 : i32
    %c0_i32_0 = arith.constant 0 : i32
    %c0_i32_1 = arith.constant 0 : i32
    return %c0_i32, %c0_i32_0 : i32, i32
  }
  func.func @transform_1(%arg0: i32, %arg1: memref<8xi32, #tpu.memory_space<smem>>) -> (i32, i32) {
    %c0_i32 = arith.constant 0 : i32
    %c0_i32_0 = arith.constant 0 : i32
    %c0_i32_1 = arith.constant 0 : i32
    return %c0_i32, %c0_i32_0 : i32, i32
  }
  func.func @transform_2(%arg0: i32, %arg1: memref<8xi32, #tpu.memory_space<smem>>) -> (i32, i32, i32) {
    %c0_i32 = arith.constant 0 : i32
    %c0_i32_0 = arith.constant 0 : i32
    %c0_i32_1 = arith.constant 0 : i32
    %c0_i32_2 = arith.constant 0 : i32
    return %c0_i32, %c0_i32_0, %c0_i32_1 : i32, i32, i32
  }
  func.func @transform_3(%arg0: i32, %arg1: memref<8xi32, #tpu.memory_space<smem>>) -> (i32, i32, i32) {
    %c0_i32 = arith.constant 0 : i32
    %c0_i32_0 = arith.constant 0 : i32
    %c0_i32_1 = arith.constant 0 : i32
    %c0_i32_2 = arith.constant 0 : i32
    return %c0_i32, %c0_i32_0, %c0_i32_1 : i32, i32, i32
  }
  func.func @transform_4(%arg0: i32, %arg1: memref<8xi32, #tpu.memory_space<smem>>) -> (i32, i32, i32) {
    %c0_i32 = arith.constant 0 : i32
    %c0_i32_0 = arith.constant 0 : i32
    %c0_i32_1 = arith.constant 0 : i32
    %c0_i32_2 = arith.constant 0 : i32
    return %c0_i32, %c0_i32_0, %c0_i32_1 : i32, i32, i32
  }
  func.func @transform_5(%arg0: i32, %arg1: memref<8xi32, #tpu.memory_space<smem>>) -> (i32, i32) {
    %c0_i32 = arith.constant 0 : i32
    %c0_i32_0 = arith.constant 0 : i32
    %c0_i32_1 = arith.constant 0 : i32
    return %c0_i32, %c0_i32_0 : i32, i32
  }
}

</mosaic_0001>

<bundles_post_ra>
// kernel: tpu_custom_call.1
= control target key start
LH: loop header
LB: loop body
LE: loop exit
PB: predicated region body
PF: predicated region fallthrough
CT: control target
= control target key end

     0   :  { %s3489_s0 = inlined_call_operand.vmem [shape: s32[8], index: 0, kind: input, shape index: {}]   ;;  %s3490_s1 = inlined_call_operand.vmem [shape: f32[50,16], index: 1, kind: input, shape index: {}]   ;;  %s3491_s2 = inlined_call_operand.vmem [shape: f32[1,32], index: 2, kind: input, shape index: {}]   ;;  %s3492_s3 = inlined_call_operand.vmem [shape: f32[3,16,32], index: 3, kind: input, shape index: {}]   ;;  %s3493_s4 = inlined_call_operand.hbm [shape: f32[3,32,32], index: 4, kind: input, shape index: {}]   ;;  %s3494_s5 = inlined_call_operand.vmem [shape: f32[4,1,32], index: 5, kind: input, shape index: {}]   ;;  %s3495_s6 = inlined_call_operand.hbm [shape: f32[8,32], index: 6, kind: output, shape index: {}]  }
   0x1   :  { %s11_s23 = sshll.u32 %s3489_s0, 4  ;;  %s12_s23 = int_to_ptr.vmem [resolvable:$true] %s11_s23 }
   0x2   :  { %s3048_s24 = scalar_lea.vmem %s12_s23, 16  ;;  %p3053_p1 = scmp.lt.s32.totalorder %s12_s23, %s12_s23 }
   0x3   :  { %p3049_p0 = scmp.ne.s32.totalorder %s12_s23, %s3048_s24  ;;  %p3054_p2 = scmp.lt.s32.totalorder %s3048_s24, %s3048_s24 }
   0x5   :  { %p3055_p3 = por %p3054_p2, %p3053_p1 }
   0x7   :  { %p3056_p4 = pnand %p3055_p3, %p3049_p0 }
   0x9   :  { %3059 = shalt.err (!%p3056_p4)  }
   0xa   :  { %s3110_s25 = smov [#allocation4]  }
   0xb   :  { %14 = dma.vmem_to_smem %s12_s23, 16, %s3110_s25, [#allocation3] }
   0xc   :  { %3104 = dma.done.wait [#allocation3], 16 }
   0xd   :  { %3105 = vsyncadd [#allocation3], 4294967280 }
   0xe   :  { %16 = sfence }
   0xf   :  { %17 = vsyncpa [#allocation6], 0 }
  0x10   :  { %18 = vsyncpa [#allocation7], 0  ;;  %s3111_s26 = smov [#allocation5]   ;;  %s3060_s29 = scalar_lea.hbm %s3493_s4, 1536 }
  0x11   :  { %s30_s27 = sshll.u32 %s3111_s26, 4  ;;  %p3061_p5 = scmp.ne.s32.totalorder %s3493_s4, %s3060_s29  ;;  %s31_s27 = int_to_ptr.vmem [resolvable:$true] %s30_s27 }
  0x12   :  { %p3064_p6 = scmp.lt.u32.totalorder %s3060_s29, %s3493_s4 }
  0x14   :  { %p3066_p7 = pnand %p3064_p6, %p3061_p5 }
  0x16   :  { %3069 = shalt.err (!%p3066_p7)
}
  0x17   :  { %s3070_s10 = scalar_lea.vmem %s31_s27, 1536  ;;  %p3075_p9 = scmp.lt.s32.totalorder %s31_s27, %s31_s27 }
  0x18   :  { %p3071_p8 = scmp.ne.s32.totalorder %s31_s27, %s3070_s10  ;;  %p3076_p10 = scmp.lt.s32.totalorder %s3070_s10, %s3070_s10 }
  0x1a   :  { %p3077_p11 = por %p3076_p10, %p3075_p9 }
  0x1c   :  { %p3078_p12 = pnand %p3077_p11, %p3071_p8 }
  0x1e   :  { %3081 = shalt.err (!%p3078_p12)
}
  0x1f   :  { %s3112_s11 = smov 128   ;;  %s3113_s12 = smov 8  }
  0x20   :  { %36 = dma.hbm_to_vmem [thread:$0]  %s3493_s4, 1536, %s31_s27, [#allocation6], %s3112_s11, %s3112_s11, %s3113_s12  }
  0x21   :  { %3106 = dma.done.wait [#allocation6], 1536  }
  0x22   :  { %3107 = vsyncadd [#allocation6], 4294965760  ;;  %v3114_v0 = vmov 0.0|0.0   ;;  %s42_s15 = sld [smem:[#allocation4]]  ;;  %s2333_s16 = sld [smem:[#allocation4 + $0x1]]  ;;  %vm3115_vm0 = vmmov 0  }
  0x23   :  { %2807 = vmatprep.subr.bf16.mxu0 %v3114_v0  ;;  %2810 = vmatprep.subr.bf16.mxu1 %v3114_v0  ;;  %v3116_v1 = vmov 0.0   ;;  %s2334_s17 = sld [smem:[#allocation4 + $0x2]]  ;;  %s2335_s18 = sld [smem:[#allocation4 + $0x3]]  ;;  %vm45_vm1 = vcmask 122880   ;;  %v76_v2 = vld [vmem:[%s3492_s3] sm:$0xff]  ;;  %v77_v3 = vld [vmem:[%s3492_s3 + $0x8] sm:$0xff] }
  0x24   :  { %2526 = vmatprep.mubr.msk.f32.mxu0 %vm3115_vm0, %v3116_v1  ;;  %2533 = vmatprep.mubr.msk.f32.mxu1 %vm3115_vm0, %v3116_v1  ;;  %s2336_s4 = sld [smem:[#allocation4 + $0x4]]  ;;  %s2337_s19 = sld [smem:[#allocation4 + $0x5]]  ;;  %v2342_v4 = vld [vmem:[%s3492_s3 + $0x10] sm:$0xff]  ;;  %v2808_v5 = vpack.c.bf16 %v77_v3, %v76_v2  ;;  %v2343_v6 = vld [vmem:[%s3492_s3 + $0x18] sm:$0xff]  ;;  %v2347_v16 = vld [vmem:[%s3492_s3 + $0x20] sm:$0xff]  ;;  %vm85_vm2 = vcmask 130048  }
  0x25   :  { %s3174_s20 = sld [smem:[#allocation4 + $0x6]]  ;;  %s3176_s21 = sld [smem:[#allocation4 + $0x7]]  ;;  %v2811_v9 = vpack.c.bf16 %v2343_v6, %v2342_v4  ;;  %v2348_v17 = vld [vmem:[%s3492_s3 + $0x28] sm:$0xff]  ;;  %v322_v19 = vld [vmem:[#allocation5 + $0x8] sm:$0xff]  ;;  %v323_v22 = vld [vmem:[#allocation5 + $0x10] sm:$0xff]  ;;  %vm338_vm3 = vcmask 261120  }
  0x26   :  { %2809 = vmatpush3.bf16.msra.mxu0 %v2808_v5  ;;  %v321_v18 = vld [vmem:[#allocation5] sm:$0xff]  ;;  %v2814_v20 = vpack.c.bf16 %v2348_v17, %v2347_v16  ;;  %v324_v23 = vld [vmem:[#allocation5 + $0x18] sm:$0xff]  ;;  %v327_v25 = vld [vmem:[#allocation5 + $0x28] sm:$0xff]  ;;  %vm573_vm4 = vcmask 253952   ;;  %vm820_vm5 = vcmask 254977   ;;  %vm1068_vm6 = vcmask 256002  }
  0x27   :  { %2812 = vmatpush3.bf16.msra.mxu1 %v2811_v9  ;;  %2813 = vmatprep.subr.bf16.mxu0 %v3114_v0  ;;  %v3232_v21 = vpack.c.bf16 %v322_v19, %v321_v18  ;;  %v326_v24 = vld [vmem:[#allocation5 + $0x20] sm:$0xff]  ;;  %v3237_v27 = vpack.c.bf16 %v324_v23, %v323_v22  ;;  %v328_v29 = vld [vmem:[#allocation5 + $0x30] sm:$0xff]  ;;  %v329_v30 = vld [vmem:[#allocation5 + $0x38] sm:$0xff]  ;;  %vm1316_vm7 = vcmask 257027   ;;  %vm1564_vm8 = vcmask 258052  }
  0x28   :  { %s43_s29 = scalar_lea.vmem %s3490_s1, %s42_s15  ;;  %s48_s8 = scalar_lea.vmem %s3490_s1, %s2333_s16  ;;  %2816 = vmatprep.subr.bf16.mxu1 %v3114_v0  ;;  %v3239_v28 = vpack.c.bf16 %v327_v25, %v326_v24  ;;  %v331_v31 = vld [vmem:[#allocation5 + $0x40] sm:$0xff]  ;;  %v332_v32 = vld [vmem:[#allocation5 + $0x48] sm:$0xff]  ;;  %v3253_v33 = vld [vmem:[%s3491_s2] sm:$0x1]  ;;  %v3255_v34 = vpack.c.bf16 %v329_v30, %v328_v29  ;;  %vm1812_vm9 = vcmask 259077   ;;  %vm2060_vm10 = vcmask 260102  }
  0x29   :  { %v44_v7 = vld [vmem:[%s43_s29] sm:$0x1]  ;;  %s52_s13 = scalar_lea.vmem %s3490_s1, %s2334_s17  ;;  %s56_s15 = scalar_lea.vmem %s3490_s1, %s2335_s18  ;;  %v3257_v35 = vpack.c.bf16 %v332_v32, %v331_v31  ;;  %v333_v36 = vld [vmem:[#allocation5 + $0x50] sm:$0xff]  ;;  %v2345_v47 = vld [vmem:[%s3494_s5 + $0x1] ss:$0 sm:$0xff]  ;;  %vm2308_vm11 = vcmask 261127  }
  0x2a   :  { %v49_v8 = vld [vmem:[%s48_s8] sm:$0x1]  ;;  %46 = vst.msk [vmem:[#allocation2] sm:$0x1] %vm45_vm1, %v44_v7  ;;  %s60_s24 = scalar_lea.vmem %s3490_s1, %s2336_s4  ;;  %s64_s27 = scalar_lea.vmem %s3490_s1, %s2337_s19  ;;  %v3306_v62 = vld [vmem:[%s3494_s5 + $0x3] sm:$0x1] }
  0x2b   :  { %50 = vst.msk [vmem:[#allocation2 + $0x1] sm:$0x1] %vm45_vm1, %v49_v8  ;;  %v53_v10 = vld [vmem:[%s52_s13] sm:$0x1]  ;;  %s68_s28 = scalar_lea.vmem %s3490_s1, %s3174_s20  ;;  %s72_s30 = scalar_lea.vmem %s3490_s1, %s3176_s21  ;;  %v2350_v3 = vld [vmem:[%s3494_s5 + $0x2] ss:$0 sm:$0xff] }
  0x2c   :  { %v57_v11 = vld [vmem:[%s56_s15] sm:$0x1]  ;;  %54 = vst.msk [vmem:[#allocation2 + $0x2] sm:$0x1] %vm45_vm1, %v53_v10 }
  0x2d   :  { %58 = vst.msk [vmem:[#allocation2 + $0x3] sm:$0x1] %vm45_vm1, %v57_v11  ;;  %v61_v12 = vld [vmem:[%s60_s24] sm:$0x1] }
  0x2e   :  { %v65_v13 = vld [vmem:[%s64_s27] sm:$0x1]  ;;  %62 = vst.msk [vmem:[#allocation2 + $0x4] sm:$0x1] %vm45_vm1, %v61_v12 }
  0x2f   :  { %66 = vst.msk [vmem:[#allocation2 + $0x5] sm:$0x1] %vm45_vm1, %v65_v13  ;;  %v69_v14 = vld [vmem:[%s68_s28] sm:$0x1] }
  0x30   :  { %v73_v15 = vld [vmem:[%s72_s30] sm:$0x1]  ;;  %70 = vst.msk [vmem:[#allocation2 + $0x6] sm:$0x1] %vm45_vm1, %v69_v14 }
  0x31   :  { %74 = vst.msk [vmem:[#allocation2 + $0x7] sm:$0x1] %vm45_vm1, %v73_v15  ;;  %v334_v37 = vld [vmem:[#allocation5 + $0x58] sm:$0xff] }
  0x32   :  { %v3267_v38 = vpack.c.bf16 %v334_v37, %v333_v36  ;;  %v2340_v43 = vld [vmem:[%s3494_s5] ss:$0 sm:$0xff]  ;;  %s3117_s5 = smov [#allocation8]  }
  0x33   :  { %s2316_s14 = sshll.u32 %s3117_s5, 4  ;;  %s2317_s14 = int_to_ptr.vmem [resolvable:$true] %s2316_s14 }
  0x34   :  { %s3082_s22 = scalar_lea.vmem %s2317_s14, 128  ;;  %p3087_p0 = scmp.lt.s32.totalorder %s2317_s14, %s2317_s14 }
  0x35   :  { %p3083_p13 = scmp.ne.s32.totalorder %s2317_s14, %s3082_s22  ;;  %p3088_p1 = scmp.lt.s32.totalorder %s3082_s22, %s3082_s22 }
  0x37   :  { %p3089_p2 = por %p3088_p1, %p3087_p0 }
  0x38   :  { %v75_v26 = vld [vmem:[#allocation2] sm:$0xff] }
  0x39   :  { %2527 = vmatmul.mubr.msk.f32.vlgmr.msra.gmra.mrb[0].mxu0 %vm85_vm2, %v75_v26  ;;  %2534 = vmatmul.mubr.msk.f32.vlgmr.msra.gmra.mrb[0].mxu1 %vm85_vm2, %v75_v26  ;;  %p3090_p3 = pnand %p3089_p2, %p3083_p13 }
  0x3a   :  { %2815 = vmatpush3.bf16.msra.mxu0 %v2814_v20  ;;  %2818 = vmatpush3.bf16.msra.mxu1 %v3232_v21 }
  0x3b   :  { %2540 = vmatprep.mubr.msk.f32.mxu0 %vm3115_vm0, %v3116_v1  ;;  %2819 = vmatprep.subr.bf16.mxu1 %v3114_v0 }
  0x3c   :  { %2822 = vmatprep.subr.bf16.mxu0 %v3114_v0  ;;  %2551 = vmatprep.mubr.msk.f32.mxu1 %vm3115_vm0, %v3116_v1 }
  0x3d   :  { %2541 = vmatmul.mubr.msk.f32.vlgmr.msra.gmra.mrb[2].mxu0 %vm85_vm2, %v75_v26 }
  0x3e   :  { %2821 = vmatpush3.bf16.msra.mxu1 %v3237_v27  ;;  %2824 = vmatpush3.bf16.msra.mxu0 %v3239_v28 }
  0x3f   :  { %2825 = vmatprep.subr.bf16.mxu0 %v3114_v0  ;;  %2562 = vmatprep.mubr.msk.f32.mxu0 %vm3115_vm0, %v3116_v1 }
  0x40   :  { %2828 = vmatprep.subr.bf16.mxu1 %v3114_v0 }
  0x41   :  { %2552 = vmatmul.mubr.msk.f32.vlgmr.msra.gmra.mrb[2].mxu1 %vm338_vm3, %v3253_v33 }
  0x42   :  { %2827 = vmatpush3.bf16.msra.mxu0 %v3255_v34  ;;  %2830 = vmatpush3.bf16.msra.mxu1 %v3257_v35 }
  0x43   :  { %2831 = vmatprep.subr.bf16.mxu1 %v3114_v0  ;;  %2573 = vmatprep.mubr.msk.f32.mxu1 %vm3115_vm0, %v3116_v1 }
  0x44   :  { %2834 = vmatprep.subr.bf16.mxu0 %v3114_v0 }
  0x45   :  { %2563 = vmatmul.mubr.msk.f32.vlgmr.msra.gmra.mrb[4].mxu0 %vm338_vm3, %v3253_v33 }
  0x46   :  { %2833 = vmatpush3.bf16.msra.mxu1 %v3267_v38  ;;  %2836 = vmatpush3.bf16.msra.mxu0 %v3232_v21 }
  0x47   :  { %2840 = vmatprep.subr.bf16.mxu1 %v3114_v0  ;;  %2837 = vmatprep.subr.bf16.mxu0 %v3114_v0 }
  0x48   :  { %2584 = vmatprep.mubr.msk.f32.mxu0 %vm3115_vm0, %v3116_v1 }
  0x49   :  { %2574 = vmatmul.mubr.msk.f32.vlgmr.msra.gmra.mrb[4].mxu1 %vm338_vm3, %v3253_v33 }
  0x4a   :  { %2842 = vmatpush3.bf16.msra.mxu1 %v3239_v28  ;;  %2839 = vmatpush3.bf16.msra.mxu0 %v3237_v27 }
  0x4b   :  { %2843 = vmatprep.subr.bf16.mxu1 %v3114_v0  ;;  %2595 = vmatprep.mubr.msk.f32.mxu1 %vm3115_vm0, %v3116_v1 }
  0x4c   :  { %2846 = vmatprep.subr.bf16.mxu0 %v3114_v0 }
  0x4e   :  { %2845 = vmatpush3.bf16.msra.mxu1 %v3255_v34 }
  0x4f   :  { %2852 = vmatprep.subr.bf16.mxu1 %v3114_v0 }
 0x10c   :  { %v236_v39 = vpop.f32.mrb[0].mxu1  ;;  %v155_v40 = vpop.f32.mrb[0].mxu0 }
 0x10d   :  { %v2535_v41 = vpop.f32.mrb[1].mxu1  ;;  %v2528_v42 = vpop.f32.mrb[1].mxu0  ;;  %v3294_v45 = vadd.f32 %v2340_v43, %v155_v40  ;;  %v3300_v51 = vadd.f32 %v2345_v47, %v236_v39 }
 0x110   :  { %v317_v44 = vpop.f32.mrb[2].mxu0 }
 0x111   :  { %v2542_v46 = vpop.f32.mrb[3].mxu0  ;;  %v3312_v5 = vadd.f32 %v2350_v3, %v317_v44 }
 0x114   :  { %v408_v48 = vpop.f32.mrb[2].mxu1 }
 0x115   :  { %v482_v49 = vadd.f32 %v408_v48, %v3294_v45  ;;  %v2553_v50 = vpop.f32.mrb[3].mxu1 }
 0x117   :  { %v2355_v52 = vmul.f32 -1.442695, %v482_v49 }
 0x118   :  { %v478_v53 = vpop.f32.mrb[4].mxu0 }
 0x119   :  { %2968 = vpow2.f32 %v2355_v52  ;;  %v489_v54 = vadd.f32 %v478_v53, %v3300_v51  ;;  %v2564_v55 = vpop.f32.mrb[5].mxu0 }
 0x11b   :  { %v2356_v56 = vmul.f32 -1.442695, %v489_v54 }
 0x11c   :  { %v562_v57 = vpop.f32.mrb[4].mxu1 }
 0x11d   :  { %v2575_v58 = vpop.f32.mrb[5].mxu1  ;;  %2970 = vpow2.f32 %v2356_v56  ;;  %v563_v2 = vadd.f32 %v3306_v62, %v562_v57 }
 0x123   :  { %v2969_v59 = vpop.eup %2968 }
 0x124   :  { %v486_v60 = vadd.f32 1.0, %v2969_v59 }
 0x126   :  { %2972 = vrcp.f32 %v486_v60 }
 0x127   :  { %v2971_v61 = vpop.eup %2970 }
 0x128   :  { %v493_v63 = vadd.f32 1.0, %v2971_v61 }
 0x12a   :  { %2974 = vrcp.f32 %v493_v63 }
 0x130   :  { %v2973_v4 = vpop.eup %2972 }
 0x131   :  { %v566_v6 = vmul.f32 %v2973_v4, %v563_v2 }
 0x133   :  { %v567_v7 = vadd.f32 %v566_v6, %v3312_v5 }
 0x134   :  { %v2975_v8 = vpop.eup %2974 }
 0x135   :  { %2976 = vtanh.f32 %v567_v7  ;;  %v569_v9 = vsub.f32 1.0, %v2975_v8  ;;  %v571_v12 = vmul.f32 %v2975_v8, %v3253_v33 }
 0x13f   :  { %v2977_v10 = vpop.eup %2976 }
 0x140   :  { %v570_v11 = vmul.f32 %v2977_v10, %v569_v9 }
 0x142   :  { %v572_v13 = vadd.f32 %v571_v12, %v570_v11 }
 0x144   :  { %2585 = vmatmul.mubr.msk.f32.vlgmr.msra.gmra.mrb[6].mxu0 %vm338_vm3, %v572_v13  ;;  %2596 = vmatmul.mubr.msk.f32.vlgmr.msra.gmra.mrb[6].mxu1 %vm338_vm3, %v572_v13  ;;  %574 = vst.msk [vmem:[#allocation8] sm:$0x1] %vm573_vm4, %v572_v13  ;;  %v816_v39 = vrot.slane %v572_v13, 7 }
 0x145   :  { %2848 = vmatpush3.bf16.msra.mxu0 %v3257_v35  ;;  %2606 = vmatprep.mubr.msk.f32.mxu0 %vm3115_vm0, %v3116_v1 }
 0x146   :  { %2849 = vmatprep.subr.bf16.mxu0 %v3114_v0  ;;  %2854 = vmatpush3.bf16.msra.mxu1 %v3232_v21 }
 0x147   :  { %2855 = vmatprep.subr.bf16.mxu1 %v3114_v0  ;;  %2617 = vmatprep.mubr.msk.f32.mxu1 %vm3115_vm0, %v3116_v1 }
 0x149   :  { %2851 = vmatpush3.bf16.msra.mxu0 %v3267_v38 }
 0x14a   :  { %2858 = vmatprep.subr.bf16.mxu0 %v3114_v0  ;;  %2857 = vmatpush3.bf16.msra.mxu1 %v3237_v27 }
 0x14b   :  { %2864 = vmatprep.subr.bf16.mxu1 %v3114_v0 }
 0x14c   :  { %2607 = vmatmul.mubr.msk.f32.vlgmr.msra.gmra.mrb[8].mxu0 %vm338_vm3, %v572_v13 }
 0x14d   :  { %2860 = vmatpush3.bf16.msra.mxu0 %v3239_v28  ;;  %2628 = vmatprep.mubr.msk.f32.mxu0 %vm3115_vm0, %v3116_v1 }
 0x14e   :  { %2861 = vmatprep.subr.bf16.mxu0 %v3114_v0 }
 0x151   :  { %2863 = vmatpush3.bf16.msra.mxu0 %v3255_v34 }
 0x152   :  { %2870 = vmatprep.subr.bf16.mxu0 %v3114_v0 }
 0x217   :  { %v644_v14 = vpop.f32.mrb[6].mxu0  ;;  %v714_v15 = vpop.f32.mrb[6].mxu1 }
 0x218   :  { %v719_v16 = vrot.slane %v644_v14, 7  ;;  %v729_v17 = vrot.slane %v714_v15, 7  ;;  %v2586_v18 = vpop.f32.mrb[7].mxu0  ;;  %v2597_v19 = vpop.f32.mrb[7].mxu1 }
 0x21a   :  { %v721_v20 = vadd.f32 %v719_v16, %v3294_v45  ;;  %v731_v22 = vadd.f32 %v729_v17, %v3300_v51 }
 0x21c   :  { %v2360_v23 = vmul.f32 -1.442695, %v721_v20  ;;  %v2361_v24 = vmul.f32 -1.442695, %v731_v22 }
 0x21e   :  { %2978 = vpow2.f32 %v2360_v23 }
 0x21f   :  { %2980 = vpow2.f32 %v2361_v24  ;;  %v804_v25 = vpop.f32.mrb[8].mxu0 }
 0x220   :  { %v2608_v26 = vpop.f32.mrb[9].mxu0  ;;  %v805_v33 = vadd.f32 %v3306_v62, %v804_v25 }
 0x222   :  { %v809_v36 = vrot.slane %v805_v33, 7 }
 0x228   :  { %v2979_v29 = vpop.eup %2978 }
 0x229   :  { %v2981_v30 = vpop.eup %2980  ;;  %v725_v31 = vadd.f32 1.0, %v2979_v29 }
 0x22a   :  { %v735_v32 = vadd.f32 1.0, %v2981_v30 }
 0x22b   :  { %2982 = vrcp.f32 %v725_v31 }
 0x22c   :  { %2984 = vrcp.f32 %v735_v32 }
 0x235   :  { %v2983_v37 = vpop.eup %2982 }
 0x236   :  { %v2985_v40 = vpop.eup %2984  ;;  %v811_v41 = vmul.f32 %v2983_v37, %v809_v36 }
 0x237   :  { %v818_v42 = vmul.f32 %v2985_v40, %v816_v39  ;;  %v814_v44 = vsub.f32 1.0, %v2985_v40 }
 0x238   :  { %v812_v43 = vadd.f32 %v811_v41, %v3312_v5 }
 0x23a   :  { %2986 = vtanh.f32 %v812_v43 }
 0x244   :  { %v2987_v46 = vpop.eup %2986 }
 0x245   :  { %v815_v47 = vmul.f32 %v2987_v46, %v814_v44 }
 0x247   :  { %v819_v48 = vadd.f32 %v818_v42, %v815_v47 }
 0x249   :  { %821 = vst.msk [vmem:[#allocation8] sm:$0x2] %vm820_vm5, %v819_v48  ;;  %v823_v49 = vrot.slane %v819_v48, 1  ;;  %v1064_v10 = vrot.slane %v819_v48, 7 }
 0x24b   :  { %2618 = vmatmul.mubr.msk.f32.vlgmr.msra.gmra.mrb[8].mxu1 %vm338_vm3, %v823_v49  ;;  %2629 = vmatmul.mubr.msk.f32.vlgmr.msra.gmra.mrb[10].mxu0 %vm338_vm3, %v823_v49 }
 0x24c   :  { %2866 = vmatpush3.bf16.msra.mxu1 %v3257_v35  ;;  %2639 = vmatprep.mubr.msk.f32.mxu1 %vm3115_vm0, %v3116_v1 }
 0x24d   :  { %2867 = vmatprep.subr.bf16.mxu1 %v3114_v0  ;;  %2872 = vmatpush3.bf16.msra.mxu0 %v3232_v21 }
 0x24e   :  { %2873 = vmatprep.subr.bf16.mxu0 %v3114_v0  ;;  %2650 = vmatprep.mubr.msk.f32.mxu0 %vm3115_vm0, %v3116_v1 }
 0x250   :  { %2869 = vmatpush3.bf16.msra.mxu1 %v3267_v38 }
 0x251   :  { %2876 = vmatprep.subr.bf16.mxu1 %v3114_v0  ;;  %2875 = vmatpush3.bf16.msra.mxu0 %v3237_v27 }
 0x252   :  { %2882 = vmatprep.subr.bf16.mxu0 %v3114_v0 }
 0x253   :  { %2640 = vmatmul.mubr.msk.f32.vlgmr.msra.gmra.mrb[10].mxu1 %vm338_vm3, %v823_v49 }
 0x254   :  { %2878 = vmatpush3.bf16.msra.mxu1 %v3239_v28  ;;  %2661 = vmatprep.mubr.msk.f32.mxu1 %vm3115_vm0, %v3116_v1 }
 0x255   :  { %2879 = vmatprep.subr.bf16.mxu1 %v3114_v0 }
 0x258   :  { %2881 = vmatpush3.bf16.msra.mxu1 %v3255_v34 }
 0x259   :  { %2888 = vmatprep.subr.bf16.mxu1 %v3114_v0 }
 0x31e   :  { %v892_v50 = vpop.f32.mrb[8].mxu1  ;;  %v962_v52 = vpop.f32.mrb[10].mxu0 }
 0x31f   :  { %v967_v53 = vrot.slane %v892_v50, 6  ;;  %v977_v54 = vrot.slane %v962_v52, 6  ;;  %v2619_v55 = vpop.f32.mrb[9].mxu1  ;;  %v2630_v56 = vpop.f32.mrb[11].mxu0 }
 0x321   :  { %v969_v57 = vadd.f32 %v967_v53, %v3294_v45  ;;  %v979_v58 = vadd.f32 %v977_v54, %v3300_v51 }
 0x323   :  { %v2365_v59 = vmul.f32 -1.442695, %v969_v57  ;;  %v2366_v60 = vmul.f32 -1.442695, %v979_v58 }
 0x325   :  { %2988 = vpow2.f32 %v2365_v59 }
 0x326   :  { %2990 = vpow2.f32 %v2366_v60  ;;  %v1052_v61 = vpop.f32.mrb[10].mxu1 }
 0x327   :  { %v2641_v63 = vpop.f32.mrb[11].mxu1  ;;  %v1053_v7 = vadd.f32 %v3306_v62, %v1052_v61 }
 0x329   :  { %v1057_v8 = vrot.slane %v1053_v7, 6 }
 0x32f   :  { %v2989_v2 = vpop.eup %2988 }
 0x330   :  { %v2991_v3 = vpop.eup %2990  ;;  %v973_v4 = vadd.f32 1.0, %v2989_v2 }
 0x331   :  { %v983_v6 = vadd.f32 1.0, %v2991_v3 }
 0x332   :  { %2992 = vrcp.f32 %v973_v4 }
 0x333   :  { %2994 = vrcp.f32 %v983_v6 }
 0x33c   :  { %v2993_v9 = vpop.eup %2992 }
 0x33d   :  { %v2995_v11 = vpop.eup %2994  ;;  %v1059_v12 = vmul.f32 %v2993_v9, %v1057_v8 }
 0x33e   :  { %v1066_v13 = vmul.f32 %v2995_v11, %v1064_v10  ;;  %v1062_v15 = vsub.f32 1.0, %v2995_v11 }
 0x33f   :  { %v1060_v14 = vadd.f32 %v1059_v12, %v3312_v5 }
 0x341   :  { %2996 = vtanh.f32 %v1060_v14 }
 0x34b   :  { %v2997_v16 = vpop.eup %2996 }
 0x34c   :  { %v1063_v17 = vmul.f32 %v2997_v16, %v1062_v15 }
 0x34e   :  { %v1067_v18 = vadd.f32 %v1066_v13, %v1063_v17 }
 0x350   :  { %1069 = vst.msk [vmem:[#allocation8] sm:$0x4] %vm1068_vm6, %v1067_v18  ;;  %v1071_v19 = vrot.slane %v1067_v18, 2  ;;  %v1312_v46 = vrot.slane %v1067_v18, 7 }
 0x352   :  { %2651 = vmatmul.mubr.msk.f32.vlgmr.msra.gmra.mrb[12].mxu0 %vm338_vm3, %v1071_v19  ;;  %2662 = vmatmul.mubr.msk.f32.vlgmr.msra.gmra.mrb[12].mxu1 %vm338_vm3, %v1071_v19 }
 0x353   :  { %2884 = vmatpush3.bf16.msra.mxu0 %v3257_v35  ;;  %2672 = vmatprep.mubr.msk.f32.mxu0 %vm3115_vm0, %v3116_v1 }
 0x354   :  { %2885 = vmatprep.subr.bf16.mxu0 %v3114_v0  ;;  %2890 = vmatpush3.bf16.msra.mxu1 %v3232_v21 }
 0x355   :  { %2891 = vmatprep.subr.bf16.mxu1 %v3114_v0  ;;  %2683 = vmatprep.mubr.msk.f32.mxu1 %vm3115_vm0, %v3116_v1 }
 0x357   :  { %2887 = vmatpush3.bf16.msra.mxu0 %v3267_v38 }
 0x358   :  { %2894 = vmatprep.subr.bf16.mxu0 %v3114_v0  ;;  %2893 = vmatpush3.bf16.msra.mxu1 %v3237_v27 }
 0x359   :  { %2900 = vmatprep.subr.bf16.mxu1 %v3114_v0 }
 0x35a   :  { %2673 = vmatmul.mubr.msk.f32.vlgmr.msra.gmra.mrb[14].mxu0 %vm338_vm3, %v1071_v19 }
 0x35b   :  { %2896 = vmatpush3.bf16.msra.mxu0 %v3239_v28  ;;  %2694 = vmatprep.mubr.msk.f32.mxu0 %vm3115_vm0, %v3116_v1 }
 0x35c   :  { %2897 = vmatprep.subr.bf16.mxu0 %v3114_v0 }
 0x35f   :  { %2899 = vmatpush3.bf16.msra.mxu0 %v3255_v34 }
 0x360   :  { %2906 = vmatprep.subr.bf16.mxu0 %v3114_v0 }
 0x425   :  { %v1140_v20 = vpop.f32.mrb[12].mxu0  ;;  %v1210_v22 = vpop.f32.mrb[12].mxu1 }
 0x426   :  { %v1215_v23 = vrot.slane %v1140_v20, 5  ;;  %v1225_v24 = vrot.slane %v1210_v22, 5  ;;  %v2652_v25 = vpop.f32.mrb[13].mxu0  ;;  %v2663_v26 = vpop.f32.mrb[13].mxu1 }
 0x428   :  { %v1217_v29 = vadd.f32 %v1215_v23, %v3294_v45  ;;  %v1227_v30 = vadd.f32 %v1225_v24, %v3300_v51 }
 0x42a   :  { %v2370_v31 = vmul.f32 -1.442695, %v1217_v29  ;;  %v2371_v32 = vmul.f32 -1.442695, %v1227_v30 }
 0x42c   :  { %2998 = vpow2.f32 %v2370_v31 }
 0x42d   :  { %3000 = vpow2.f32 %v2371_v32  ;;  %v1300_v33 = vpop.f32.mrb[14].mxu0 }
 0x42e   :  { %v2674_v36 = vpop.f32.mrb[15].mxu0  ;;  %v1301_v42 = vadd.f32 %v3306_v62, %v1300_v33 }
 0x430   :  { %v1305_v43 = vrot.slane %v1301_v42, 5 }
 0x436   :  { %v2999_v37 = vpop.eup %2998 }
 0x437   :  { %v3001_v39 = vpop.eup %3000  ;;  %v1221_v40 = vadd.f32 1.0, %v2999_v37 }
 0x438   :  { %v1231_v41 = vadd.f32 1.0, %v3001_v39 }
 0x439   :  { %3002 = vrcp.f32 %v1221_v40 }
 0x43a   :  { %3004 = vrcp.f32 %v1231_v41 }
 0x443   :  { %v3003_v44 = vpop.eup %3002 }
 0x444   :  { %v3005_v47 = vpop.eup %3004  ;;  %v1307_v48 = vmul.f32 %v3003_v44, %v1305_v43 }
 0x445   :  { %v1314_v49 = vmul.f32 %v3005_v47, %v1312_v46  ;;  %v1310_v52 = vsub.f32 1.0, %v3005_v47 }
 0x446   :  { %v1308_v50 = vadd.f32 %v1307_v48, %v3312_v5 }
 0x448   :  { %3006 = vtanh.f32 %v1308_v50 }
 0x452   :  { %v3007_v53 = vpop.eup %3006 }
 0x453   :  { %v1311_v54 = vmul.f32 %v3007_v53, %v1310_v52 }
 0x455   :  { %v1315_v55 = vadd.f32 %v1314_v49, %v1311_v54 }
 0x457   :  { %1317 = vst.msk [vmem:[#allocation8] sm:$0x8] %vm1316_vm7, %v1315_v55  ;;  %v1319_v56 = vrot.slane %v1315_v55, 3  ;;  %v1560_v16 = vrot.slane %v1315_v55, 7 }
 0x459   :  { %2684 = vmatmul.mubr.msk.f32.vlgmr.msra.gmra.mrb[14].mxu1 %vm338_vm3, %v1319_v56  ;;  %2695 = vmatmul.mubr.msk.f32.vlgmr.msra.gmra.mrb[16].mxu0 %vm338_vm3, %v1319_v56 }
 0x45a   :  { %2902 = vmatpush3.bf16.msra.mxu1 %v3257_v35  ;;  %2705 = vmatprep.mubr.msk.f32.mxu1 %vm3115_vm0, %v3116_v1 }
 0x45b   :  { %2903 = vmatprep.subr.bf16.mxu1 %v3114_v0  ;;  %2908 = vmatpush3.bf16.msra.mxu0 %v3232_v21 }
 0x45c   :  { %2909 = vmatprep.subr.bf16.mxu0 %v3114_v0  ;;  %2716 = vmatprep.mubr.msk.f32.mxu0 %vm3115_vm0, %v3116_v1 }
 0x45e   :  { %2905 = vmatpush3.bf16.msra.mxu1 %v3267_v38 }
 0x45f   :  { %2912 = vmatprep.subr.bf16.mxu1 %v3114_v0  ;;  %2911 = vmatpush3.bf16.msra.mxu0 %v3237_v27 }
 0x460   :  { %2918 = vmatprep.subr.bf16.mxu0 %v3114_v0 }
 0x461   :  { %2706 = vmatmul.mubr.msk.f32.vlgmr.msra.gmra.mrb[16].mxu1 %vm338_vm3, %v1319_v56 }
 0x462   :  { %2914 = vmatpush3.bf16.msra.mxu1 %v3239_v28  ;;  %2727 = vmatprep.mubr.msk.f32.mxu1 %vm3115_vm0, %v3116_v1 }
 0x463   :  { %2915 = vmatprep.subr.bf16.mxu1 %v3114_v0 }
 0x466   :  { %2917 = vmatpush3.bf16.msra.mxu1 %v3255_v34 }
 0x467   :  { %2924 = vmatprep.subr.bf16.mxu1 %v3114_v0 }
 0x52c   :  { %v1388_v57 = vpop.f32.mrb[14].mxu1  ;;  %v1458_v58 = vpop.f32.mrb[16].mxu0 }
 0x52d   :  { %v1463_v59 = vrot.slane %v1388_v57, 4  ;;  %v1473_v60 = vrot.slane %v1458_v58, 4  ;;  %v2685_v61 = vpop.f32.mrb[15].mxu1  ;;  %v2696_v63 = vpop.f32.mrb[17].mxu0 }
 0x52f   :  { %v1465_v2 = vadd.f32 %v1463_v59, %v3294_v45  ;;  %v1475_v3 = vadd.f32 %v1473_v60, %v3300_v51 }
 0x531   :  { %v2375_v4 = vmul.f32 -1.442695, %v1465_v2  ;;  %v2376_v6 = vmul.f32 -1.442695, %v1475_v3 }
 0x533   :  { %3008 = vpow2.f32 %v2375_v4 }
 0x534   :  { %3010 = vpow2.f32 %v2376_v6  ;;  %v1548_v7 = vpop.f32.mrb[16].mxu1 }
 0x535   :  { %v2707_v8 = vpop.f32.mrb[17].mxu1  ;;  %v1549_v13 = vadd.f32 %v3306_v62, %v1548_v7 }
 0x537   :  { %v1553_v14 = vrot.slane %v1549_v13, 4 }
 0x53d   :  { %v3009_v9 = vpop.eup %3008 }
 0x53e   :  { %v3011_v10 = vpop.eup %3010  ;;  %v1469_v11 = vadd.f32 1.0, %v3009_v9 }
 0x53f   :  { %v1479_v12 = vadd.f32 1.0, %v3011_v10 }
 0x540   :  { %3012 = vrcp.f32 %v1469_v11 }
 0x541   :  { %3014 = vrcp.f32 %v1479_v12 }
 0x54a   :  { %v3013_v15 = vpop.eup %3012 }
 0x54b   :  { %v3015_v17 = vpop.eup %3014  ;;  %v1555_v18 = vmul.f32 %v3013_v15, %v1553_v14 }
 0x54c   :  { %v1562_v19 = vmul.f32 %v3015_v17, %v1560_v16  ;;  %v1558_v22 = vsub.f32 1.0, %v3015_v17 }
 0x54d   :  { %v1556_v20 = vadd.f32 %v1555_v18, %v3312_v5 }
 0x54f   :  { %3016 = vtanh.f32 %v1556_v20 }
 0x559   :  { %v3017_v23 = vpop.eup %3016 }
 0x55a   :  { %v1559_v24 = vmul.f32 %v3017_v23, %v1558_v22 }
 0x55c   :  { %v1563_v25 = vadd.f32 %v1562_v19, %v1559_v24 }
 0x55e   :  { %1565 = vst.msk [vmem:[#allocation8] sm:$0x10] %vm1564_vm8, %v1563_v25  ;;  %v1567_v26 = vrot.slane %v1563_v25, 4  ;;  %v1808_v53 = vrot.slane %v1563_v25, 7 }
 0x560   :  { %2717 = vmatmul.mubr.msk.f32.vlgmr.msra.gmra.mrb[18].mxu0 %vm338_vm3, %v1567_v26  ;;  %2728 = vmatmul.mubr.msk.f32.vlgmr.msra.gmra.mrb[18].mxu1 %vm338_vm3, %v1567_v26 }
 0x561   :  { %2920 = vmatpush3.bf16.msra.mxu0 %v3257_v35  ;;  %2738 = vmatprep.mubr.msk.f32.mxu0 %vm3115_vm0, %v3116_v1 }
 0x562   :  { %2921 = vmatprep.subr.bf16.mxu0 %v3114_v0  ;;  %2926 = vmatpush3.bf16.msra.mxu1 %v3232_v21 }
 0x563   :  { %2927 = vmatprep.subr.bf16.mxu1 %v3114_v0  ;;  %2749 = vmatprep.mubr.msk.f32.mxu1 %vm3115_vm0, %v3116_v1 }
 0x565   :  { %2923 = vmatpush3.bf16.msra.mxu0 %v3267_v38 }
 0x566   :  { %2930 = vmatprep.subr.bf16.mxu0 %v3114_v0  ;;  %2929 = vmatpush3.bf16.msra.mxu1 %v3237_v27 }
 0x567   :  { %2936 = vmatprep.subr.bf16.mxu1 %v3114_v0 }
 0x568   :  { %2739 = vmatmul.mubr.msk.f32.vlgmr.msra.gmra.mrb[20].mxu0 %vm338_vm3, %v1567_v26 }
 0x569   :  { %2932 = vmatpush3.bf16.msra.mxu0 %v3239_v28  ;;  %2760 = vmatprep.mubr.msk.f32.mxu0 %vm3115_vm0, %v3116_v1 }
 0x56a   :  { %2933 = vmatprep.subr.bf16.mxu0 %v3114_v0 }
 0x56d   :  { %2935 = vmatpush3.bf16.msra.mxu0 %v3255_v34 }
 0x56e   :  { %2942 = vmatprep.subr.bf16.mxu0 %v3114_v0 }
 0x633   :  { %v1636_v29 = vpop.f32.mrb[18].mxu0  ;;  %v1706_v30 = vpop.f32.mrb[18].mxu1 }
 0x634   :  { %v1711_v31 = vrot.slane %v1636_v29, 3  ;;  %v1721_v32 = vrot.slane %v1706_v30, 3  ;;  %v2718_v33 = vpop.f32.mrb[19].mxu0  ;;  %v2729_v36 = vpop.f32.mrb[19].mxu1 }
 0x636   :  { %v1713_v37 = vadd.f32 %v1711_v31, %v3294_v45  ;;  %v1723_v39 = vadd.f32 %v1721_v32, %v3300_v51 }
 0x638   :  { %v2380_v40 = vmul.f32 -1.442695, %v1713_v37  ;;  %v2381_v41 = vmul.f32 -1.442695, %v1723_v39 }
 0x63a   :  { %3018 = vpow2.f32 %v2380_v40 }
 0x63b   :  { %3020 = vpow2.f32 %v2381_v41  ;;  %v1796_v42 = vpop.f32.mrb[20].mxu0 }
 0x63c   :  { %v2740_v43 = vpop.f32.mrb[21].mxu0  ;;  %v1797_v49 = vadd.f32 %v3306_v62, %v1796_v42 }
 0x63e   :  { %v1801_v50 = vrot.slane %v1797_v49, 3 }
 0x644   :  { %v3019_v44 = vpop.eup %3018 }
 0x645   :  { %v3021_v46 = vpop.eup %3020  ;;  %v1717_v47 = vadd.f32 1.0, %v3019_v44 }
 0x646   :  { %v1727_v48 = vadd.f32 1.0, %v3021_v46 }
 0x647   :  { %3022 = vrcp.f32 %v1717_v47 }
 0x648   :  { %3024 = vrcp.f32 %v1727_v48 }
 0x651   :  { %v3023_v52 = vpop.eup %3022 }
 0x652   :  { %v3025_v54 = vpop.eup %3024  ;;  %v1803_v55 = vmul.f32 %v3023_v52, %v1801_v50 }
 0x653   :  { %v1810_v56 = vmul.f32 %v3025_v54, %v1808_v53  ;;  %v1806_v58 = vsub.f32 1.0, %v3025_v54 }
 0x654   :  { %v1804_v57 = vadd.f32 %v1803_v55, %v3312_v5 }
 0x656   :  { %3026 = vtanh.f32 %v1804_v57 }
 0x660   :  { %v3027_v59 = vpop.eup %3026 }
 0x661   :  { %v1807_v60 = vmul.f32 %v3027_v59, %v1806_v58 }
 0x663   :  { %v1811_v61 = vadd.f32 %v1810_v56, %v1807_v60 }
 0x665   :  { %1813 = vst.msk [vmem:[#allocation8] sm:$0x20] %vm1812_vm9, %v1811_v61  ;;  %v1815_v63 = vrot.slane %v1811_v61, 5  ;;  %v2056_v18 = vrot.slane %v1811_v61, 7 }
 0x667   :  { %2750 = vmatmul.mubr.msk.f32.vlgmr.msra.gmra.mrb[20].mxu1 %vm338_vm3, %v1815_v63  ;;  %2761 = vmatmul.mubr.msk.f32.vlgmr.msra.gmra.mrb[22].mxu0 %vm338_vm3, %v1815_v63 }
 0x668   :  { %2938 = vmatpush3.bf16.msra.mxu1 %v3257_v35  ;;  %2771 = vmatprep.mubr.msk.f32.mxu1 %vm3115_vm0, %v3116_v1 }
 0x669   :  { %2939 = vmatprep.subr.bf16.mxu1 %v3114_v0  ;;  %2944 = vmatpush3.bf16.msra.mxu0 %v3232_v21 }
 0x66a   :  { %2945 = vmatprep.subr.bf16.mxu0 %v3114_v0  ;;  %2782 = vmatprep.mubr.msk.f32.mxu0 %vm3115_vm0, %v3116_v1 }
 0x66c   :  { %2941 = vmatpush3.bf16.msra.mxu1 %v3267_v38 }
 0x66d   :  { %2948 = vmatprep.subr.bf16.mxu1 %v3114_v0  ;;  %2947 = vmatpush3.bf16.msra.mxu0 %v3237_v27 }
 0x66e   :  { %2954 = vmatprep.subr.bf16.mxu0 %v3114_v0 }
 0x66f   :  { %2772 = vmatmul.mubr.msk.f32.vlgmr.msra.gmra.mrb[22].mxu1 %vm338_vm3, %v1815_v63 }
 0x670   :  { %2950 = vmatpush3.bf16.msra.mxu1 %v3239_v28  ;;  %2793 = vmatprep.mubr.msk.f32.mxu1 %vm3115_vm0, %v3116_v1 }
 0x671   :  { %2951 = vmatprep.subr.bf16.mxu1 %v3114_v0 }
 0x674   :  { %2953 = vmatpush3.bf16.msra.mxu1 %v3255_v34 }
 0x73a   :  { %v1884_v21 = vpop.f32.mrb[20].mxu1  ;;  %v1954_v2 = vpop.f32.mrb[22].mxu0 }
 0x73b   :  { %v1959_v3 = vrot.slane %v1884_v21, 2  ;;  %v1969_v4 = vrot.slane %v1954_v2, 2  ;;  %v2751_v6 = vpop.f32.mrb[21].mxu1  ;;  %v2762_v7 = vpop.f32.mrb[23].mxu0 }
 0x73d   :  { %v1961_v27 = vadd.f32 %v1959_v3, %v3294_v45  ;;  %v1971_v8 = vadd.f32 %v1969_v4, %v3300_v51 }
 0x73f   :  { %v2385_v9 = vmul.f32 -1.442695, %v1961_v27  ;;  %v2386_v10 = vmul.f32 -1.442695, %v1971_v8 }
 0x741   :  { %3028 = vpow2.f32 %v2385_v9 }
 0x742   :  { %3030 = vpow2.f32 %v2386_v10  ;;  %v2044_v28 = vpop.f32.mrb[22].mxu1 }
 0x743   :  { %v2773_v11 = vpop.f32.mrb[23].mxu1  ;;  %v2045_v15 = vadd.f32 %v3306_v62, %v2044_v28 }
 0x745   :  { %v2049_v16 = vrot.slane %v2045_v15, 2 }
 0x74b   :  { %v3029_v12 = vpop.eup %3028 }
 0x74c   :  { %v3031_v13 = vpop.eup %3030  ;;  %v1965_v14 = vadd.f32 1.0, %v3029_v12 }
 0x74d   :  { %v1975_v34 = vadd.f32 1.0, %v3031_v13 }
 0x74e   :  { %3032 = vrcp.f32 %v1965_v14 }
 0x74f   :  { %3034 = vrcp.f32 %v1975_v34 }
 0x758   :  { %v3033_v17 = vpop.eup %3032 }
 0x759   :  { %v3035_v19 = vpop.eup %3034  ;;  %v2051_v20 = vmul.f32 %v3033_v17, %v2049_v16 }
 0x75a   :  { %v2058_v22 = vmul.f32 %v3035_v19, %v2056_v18  ;;  %v2054_v24 = vsub.f32 1.0, %v3035_v19 }
 0x75b   :  { %v2052_v23 = vadd.f32 %v2051_v20, %v3312_v5 }
 0x75d   :  { %3036 = vtanh.f32 %v2052_v23 }
 0x767   :  { %v3037_v25 = vpop.eup %3036 }
 0x768   :  { %v2055_v26 = vmul.f32 %v3037_v25, %v2054_v24 }
 0x76a   :  { %v2059_v29 = vadd.f32 %v2058_v22, %v2055_v26 }
 0x76c   :  { %2061 = vst.msk [vmem:[#allocation8] sm:$0x40] %vm2060_vm10, %v2059_v29  ;;  %v2063_v30 = vrot.slane %v2059_v29, 6  ;;  %v2304_v50 = vrot.slane %v2059_v29, 7 }
 0x76e   :  { %2783 = vmatmul.mubr.msk.f32.vlgmr.msra.gmra.mrb[24].mxu0 %vm338_vm3, %v2063_v30  ;;  %2794 = vmatmul.mubr.msk.f32.vlgmr.msra.gmra.mrb[24].mxu1 %vm338_vm3, %v2063_v30 }
 0x76f   :  { %2956 = vmatpush3.bf16.msra.mxu0 %v3257_v35  ;;  %2804 = vmatprep.mubr.msk.f32.mxu0 %vm3115_vm0, %v3116_v1 }
 0x770   :  { %2957 = vmatprep.subr.bf16.mxu0 %v3114_v0 }
 0x773   :  { %2959 = vmatpush3.bf16.msra.mxu0 %v3267_v38 }
 0x776   :  { %2805 = vmatmul.mubr.msk.f32.vlgmr.msra.gmra.mrb[26].mxu0 %vm338_vm3, %v2063_v30 }
 0x841   :  { %v2132_v31 = vpop.f32.mrb[24].mxu0  ;;  %v2202_v32 = vpop.f32.mrb[24].mxu1 }
 0x842   :  { %v2207_v33 = vrot.slane %v2132_v31, 1  ;;  %v2217_v36 = vrot.slane %v2202_v32, 1  ;;  %v2784_v37 = vpop.f32.mrb[25].mxu0  ;;  %v2795_v39 = vpop.f32.mrb[25].mxu1 }
 0x844   :  { %v2209_v40 = vadd.f32 %v2207_v33, %v3294_v45  ;;  %v2219_v41 = vadd.f32 %v2217_v36, %v3300_v51 }
 0x846   :  { %v2390_v35 = vmul.f32 -1.442695, %v2209_v40  ;;  %v2391_v42 = vmul.f32 -1.442695, %v2219_v41 }
 0x848   :  { %3038 = vpow2.f32 %v2390_v35 }
 0x849   :  { %3040 = vpow2.f32 %v2391_v42  ;;  %v2292_v1 = vpop.f32.mrb[26].mxu0 }
 0x84a   :  { %v2806_v0 = vpop.f32.mrb[27].mxu0  ;;  %v2293_v47 = vadd.f32 %v3306_v62, %v2292_v1 }
 0x84c   :  { %v2297_v48 = vrot.slane %v2293_v47, 1 }
 0x852   :  { %v3039_v43 = vpop.eup %3038 }
 0x853   :  { %v3041_v38 = vpop.eup %3040  ;;  %v2213_v44 = vadd.f32 1.0, %v3039_v43 }
 0x854   :  { %v2223_v46 = vadd.f32 1.0, %v3041_v38 }
 0x855   :  { %3042 = vrcp.f32 %v2213_v44 }
 0x856   :  { %3044 = vrcp.f32 %v2223_v46 }
 0x85f   :  { %v3043_v49 = vpop.eup %3042 }
 0x860   :  { %v3045_v45 = vpop.eup %3044  ;;  %v2299_v52 = vmul.f32 %v3043_v49, %v2297_v48 }
 0x861   :  { %v2306_v51 = vmul.f32 %v3045_v45, %v2304_v50  ;;  %v2302_v54 = vsub.f32 1.0, %v3045_v45 }
 0x862   :  { %v2300_v53 = vadd.f32 %v2299_v52, %v3312_v5 }
 0x864   :  { %3046 = vtanh.f32 %v2300_v53 }
 0x86e   :  { %v3047_v55 = vpop.eup %3046 }
 0x86f   :  { %v2303_v56 = vmul.f32 %v3047_v55, %v2302_v54 }
 0x871   :  { %v2307_v57 = vadd.f32 %v2306_v51, %v2303_v56 }
 0x873   :  { %2309 = vst.msk [vmem:[#allocation8] sm:$0x80] %vm2308_vm11, %v2307_v57 }
 0x874   :  { %3093 = shalt.err (!%p3090_p3)
}
 0x875   :  { %s3094_s23 = scalar_lea.hbm %s3495_s6, 128 }
 0x876   :  { %p3095_p4 = scmp.ne.s32.totalorder %s3495_s6, %s3094_s23  ;;  %p3098_p5 = scmp.lt.u32.totalorder %s3094_s23, %s3495_s6 }
 0x878   :  { %p3100_p6 = pnand %p3098_p5, %p3095_p4 }
 0x87a   :  { %3103 = shalt.err (!%p3100_p6)
}
 0x87b   :  { %2319 = dma.vmem_to_hbm [thread:$0]  %s2317_s14, 128, %s3495_s6, [#allocation7]  }
 0x87c   :  { %3108 = dma.done.wait [#allocation7], 128  }
 0x87d   :  { %3109 = vsyncadd [#allocation7], 4294967168 }
 0x87e   :  { %2323 = vsyncpa [#allocation6], 1 }
 0x87f   :  { %2324 = vsyncpa [#allocation7], 1 }

</bundles_post_ra>
